<compile_context>
chip_gen: v7x
topology: tpu7x:2x2x1
jax: 0.10.0
libtpu: 0.0.40
codegen_flags: <defaults>
</compile_context>

<pallas_src>
import jax
import jax.numpy as jnp
from jax.experimental import pallas as pl
from jax.experimental.pallas import tpu as pltpu  # noqa: F401  (TPU backend)

# ----------------------------- configuration --------------------------------
B, S, H = 2, 8, 32            # batch, sequence, hidden_size
NUM_HEADS = 4
HEAD_DIM = H // NUM_HEADS
FFN = 4 * H                   # intermediate size
NUM_LAYERS = 2
VOCAB = 64
NUM_LABELS = 2
LN_EPS = 1e-5
INIT_RANGE = 0.02             # config.initializer_range


# ------------------------------ kernel helpers -------------------------------
def _layernorm(x, g, b):
    mu = jnp.mean(x, axis=-1, keepdims=True)
    var = jnp.mean((x - mu) ** 2, axis=-1, keepdims=True)
    return (x - mu) * jax.lax.rsqrt(var + LN_EPS) * g + b


def _gelu(x):
    # TODO(synk): RoBERTa uses erf-GELU; tanh approximation is numerically close.
    c = 0.7978845608028654  # sqrt(2/pi)
    return 0.5 * x * (1.0 + jnp.tanh(c * (x + 0.044715 * x * x * x)))


# ------------------------- single fused Pallas kernel ------------------------
def codebert_kernel(x_ref, mask_ref,
                    emb_g_ref, emb_b_ref,
                    wqkv_ref, bqkv_ref, wo_ref, bo_ref, ln1g_ref, ln1b_ref,
                    w1_ref, b1_ref, w2_ref, b2_ref, ln2g_ref, ln2b_ref,
                    wd_ref, bd_ref, wcls_ref, bcls_ref,
                    prob_ref):
    f32 = jnp.float32

    # ---- embeddings LayerNorm (x_ref is word+pos, flattened to (B*S, H)) ----
    x = _layernorm(x_ref[...], emb_g_ref[...], emb_b_ref[...])        # (B*S, H)

    # ---- attention mask bias, replicated per (batch, head) ----
    mask = mask_ref[...]                                               # (B, S)
    bias = (1.0 - mask) * (-1e9)                                       # (B, S)
    bias_n = jnp.concatenate(
        [bias[b:b + 1, :][None] for b in range(B) for _ in range(NUM_HEADS)],
        axis=0)                                                        # (B*NH, 1, S)
    scale = 1.0 / float(HEAD_DIM) ** 0.5

    # ---- transformer layers (static unroll; weights resident in VMEM) ----
    for L in range(NUM_LAYERS):
        # fused QKV projection over the whole batch: (B*S, H) @ (H, 3H)
        qkv = jnp.dot(x, wqkv_ref[L], preferred_element_type=f32) + bqkv_ref[L]

        # split into per-(batch, head) tiles with a leading batch axis
        q_l, k_l, v_l = [], [], []
        for b in range(B):
            rows = slice(b * S, (b + 1) * S)
            for h in range(NUM_HEADS):
                cq = slice(h * HEAD_DIM, (h + 1) * HEAD_DIM)
                ck = slice(H + h * HEAD_DIM, H + (h + 1) * HEAD_DIM)
                cv = slice(2 * H + h * HEAD_DIM, 2 * H + (h + 1) * HEAD_DIM)
                q_l.append(qkv[rows, cq][None])
                k_l.append(qkv[rows, ck][None])
                v_l.append(qkv[rows, cv][None])
        qh = jnp.concatenate(q_l, axis=0)                              # (B*NH, S, HD)
        kh = jnp.concatenate(k_l, axis=0)
        vh = jnp.concatenate(v_l, axis=0)

        # one batched contraction for all heads / batches
        s = jnp.einsum('nqd,nkd->nqk', qh, kh,
                       preferred_element_type=f32) * scale + bias_n
        s = s - jnp.max(s, axis=-1, keepdims=True)
        p = jnp.exp(s)
        p = p * pl.reciprocal(jnp.sum(p, axis=-1, keepdims=True), approx=True)
        ctx = jnp.einsum('nqk,nkd->nqd', p, vh,
                         preferred_element_type=f32)                   # (B*NH, S, HD)

        # merge heads back to the flat (B*S, H) residual stream
        ctx2d = jnp.concatenate(
            [jnp.concatenate([ctx[b * NUM_HEADS + h] for h in range(NUM_HEADS)],
                             axis=-1)
             for b in range(B)], axis=0)                               # (B*S, H)

        attn_out = jnp.dot(ctx2d, wo_ref[L], preferred_element_type=f32) + bo_ref[L]
        x = _layernorm(x + attn_out, ln1g_ref[L], ln1b_ref[L])

        # FFN (whole batch in one matmul each)
        hmid = _gelu(jnp.dot(x, w1_ref[L], preferred_element_type=f32) + b1_ref[L])
        y = jnp.dot(hmid, w2_ref[L], preferred_element_type=f32) + b2_ref[L]
        x = _layernorm(x + y, ln2g_ref[L], ln2b_ref[L])

    # ---- [CLS] token per batch element (rows b*S) ----
    cls = jnp.concatenate([x[b * S:b * S + 1, :] for b in range(B)], axis=0)  # (B, H)

    # ---- RobertaClassificationHead (dropout = id at eval) + softmax ----
    hcls = jnp.tanh(jnp.dot(cls, wd_ref[...], preferred_element_type=f32) + bd_ref[...])
    logits = jnp.dot(hcls, wcls_ref[...], preferred_element_type=f32) + bcls_ref[...]
    m = jnp.max(logits, axis=-1, keepdims=True)
    e = jnp.exp(logits - m)
    prob_ref[...] = e * pl.reciprocal(jnp.sum(e, axis=-1, keepdims=True), approx=False)
    # TODO(synk): labels/CrossEntropyLoss branch omitted (labels.float() with a
    # [B]-shaped target is ill-typed for nn.CrossEntropyLoss); inference only.


# ------------------------------- wrapper -------------------------------------
def codebert_forward(input_ids, attention_mask, params):
    # embedding gather is glue; everything else runs in the fused kernel
    word = jnp.take(params["word_emb"], input_ids, axis=0)             # (B, S, H)
    pos = params["pos_emb"][None, :, :]                                # (1, S, H)
    x2d = (word + pos).reshape(B * S, H)                               # (B*S, H)

    return pl.pallas_call(
        codebert_kernel,
        out_shape=jax.ShapeDtypeStruct((B, NUM_LABELS), jnp.float32),
    )(x2d, attention_mask,
      params["emb_ln_g"], params["emb_ln_b"],
      params["wqkv"], params["bqkv"], params["wo"], params["bo"],
      params["ln1_g"], params["ln1_b"],
      params["w1"], params["b1"], params["w2"], params["b2"],
      params["ln2_g"], params["ln2_b"],
      params["cls_dense_w"], params["cls_dense_b"],
      params["cls_out_w"], params["cls_out_b"])


# ---------------------------- deterministic init ------------------------------
def init_params(key):
    ks = iter(jax.random.split(key, 32))

    def nrm(shape, std=INIT_RANGE):
        return std * jax.random.normal(next(ks), shape, jnp.float32)

    return {
        "word_emb": nrm((VOCAB, H)),
        "pos_emb": nrm((S, H)),
        "emb_ln_g": jnp.ones((1, H), jnp.float32),
        "emb_ln_b": jnp.zeros((1, H), jnp.float32),
        # per-layer weights stacked on a leading layer axis (static-indexed in kernel)
        "wqkv": nrm((NUM_LAYERS, H, 3 * H)),
        "bqkv": jnp.zeros((NUM_LAYERS, 1, 3 * H), jnp.float32),
        "wo": nrm((NUM_LAYERS, H, H)),
        "bo": jnp.zeros((NUM_LAYERS, 1, H), jnp.float32),
        "ln1_g": jnp.ones((NUM_LAYERS, 1, H), jnp.float32),
        "ln1_b": jnp.zeros((NUM_LAYERS, 1, H), jnp.float32),
        "w1": nrm((NUM_LAYERS, H, FFN)),
        "b1": jnp.zeros((NUM_LAYERS, 1, FFN), jnp.float32),
        "w2": nrm((NUM_LAYERS, FFN, H)),
        "b2": jnp.zeros((NUM_LAYERS, 1, H), jnp.float32),
        "ln2_g": jnp.ones((NUM_LAYERS, 1, H), jnp.float32),
        "ln2_b": jnp.zeros((NUM_LAYERS, 1, H), jnp.float32),
        # classification head (dense / out_proj ~ N(0, initializer_range))
        "cls_dense_w": nrm((H, H)),
        "cls_dense_b": jnp.zeros((1, H), jnp.float32),
        "cls_out_w": nrm((H, NUM_LABELS)),
        "cls_out_b": jnp.zeros((1, NUM_LABELS), jnp.float32),
    }


# ----------------------------------- main -------------------------------------
if __name__ == "__main__":
    root = jax.random.PRNGKey(0)
    k_params, k_ids = jax.random.split(root)

    params = init_params(k_params)
    input_ids = jax.random.randint(k_ids, (B, S), 0, VOCAB, dtype=jnp.int32)
    attention_mask = jnp.ones((B, S), jnp.float32)

    fwd = jax.jit(codebert_forward)
    prob = fwd(input_ids, attention_mask, params)
    prob = jax.block_until_ready(prob)

    assert prob.shape == (B, NUM_LABELS)
    assert bool(jnp.all(jnp.isfinite(prob)))
    assert bool(jnp.allclose(jnp.sum(prob, axis=-1), 1.0, atol=1e-5))
    print("KERNEL_OK")
</pallas_src>

<mosaic_0001>
module attributes {stable_mosaic.version = 11 : i64} {
  func.func @codebert_kernel(%arg0: memref<16x32xf32, #tpu.memory_space<vmem>>, %arg1: memref<2x8xf32, #tpu.memory_space<vmem>>, %arg2: memref<1x32xf32, #tpu.memory_space<vmem>>, %arg3: memref<1x32xf32, #tpu.memory_space<vmem>>, %arg4: memref<2x32x96xf32, #tpu.memory_space<vmem>>, %arg5: memref<2x1x96xf32, #tpu.memory_space<vmem>>, %arg6: memref<2x32x32xf32, #tpu.memory_space<vmem>>, %arg7: memref<2x1x32xf32, #tpu.memory_space<vmem>>, %arg8: memref<2x1x32xf32, #tpu.memory_space<vmem>>, %arg9: memref<2x1x32xf32, #tpu.memory_space<vmem>>, %arg10: memref<2x32x128xf32, #tpu.memory_space<vmem>>, %arg11: memref<2x1x128xf32, #tpu.memory_space<vmem>>, %arg12: memref<2x128x32xf32, #tpu.memory_space<vmem>>, %arg13: memref<2x1x32xf32, #tpu.memory_space<vmem>>, %arg14: memref<2x1x32xf32, #tpu.memory_space<vmem>>, %arg15: memref<2x1x32xf32, #tpu.memory_space<vmem>>, %arg16: memref<32x32xf32, #tpu.memory_space<vmem>>, %arg17: memref<1x32xf32, #tpu.memory_space<vmem>>, %arg18: memref<32x2xf32, #tpu.memory_space<vmem>>, %arg19: memref<1x2xf32, #tpu.memory_space<vmem>>, %arg20: memref<2x2xf32, #tpu.memory_space<vmem>>) attributes {dimension_semantics = [], scalar_prefetch = 0 : i64, scratch_operands = 0 : i64, tpu.core_type = #tpu.core_type<tc>} {
    %c0 = arith.constant 0 : index
    %c0_0 = arith.constant 0 : index
    %0 = vector.load %arg0[%c0, %c0_0] : memref<16x32xf32, #tpu.memory_space<vmem>>, vector<16x32xf32>
    %c0_1 = arith.constant 0 : index
    %c0_2 = arith.constant 0 : index
    %1 = vector.load %arg2[%c0_1, %c0_2] : memref<1x32xf32, #tpu.memory_space<vmem>>, vector<1x32xf32>
    %c0_3 = arith.constant 0 : index
    %c0_4 = arith.constant 0 : index
    %2 = vector.load %arg3[%c0_3, %c0_4] : memref<1x32xf32, #tpu.memory_space<vmem>>, vector<1x32xf32>
    %cst = arith.constant dense<0.000000e+00> : vector<16xf32>
    %3 = vector.multi_reduction <add>, %0, %cst [1] : vector<16x32xf32> to vector<16xf32>
    %4 = vector.shape_cast %3 : vector<16xf32> to vector<16x1xf32>
    %cst_5 = arith.constant 3.200000e+01 : f32
    %5 = vector.broadcast %cst_5 : f32 to vector<16x1xf32>
    %6 = arith.divf %4, %5 : vector<16x1xf32>
    %7 = vector.broadcast %6 : vector<16x1xf32> to vector<16x32xf32>
    %8 = arith.subf %0, %7 : vector<16x32xf32>
    %9 = arith.mulf %8, %8 : vector<16x32xf32>
    %cst_6 = arith.constant dense<0.000000e+00> : vector<16xf32>
    %10 = vector.multi_reduction <add>, %9, %cst_6 [1] : vector<16x32xf32> to vector<16xf32>
    %11 = vector.shape_cast %10 : vector<16xf32> to vector<16x1xf32>
    %cst_7 = arith.constant 3.200000e+01 : f32
    %12 = vector.broadcast %cst_7 : f32 to vector<16x1xf32>
    %13 = arith.divf %11, %12 : vector<16x1xf32>
    %14 = vector.broadcast %6 : vector<16x1xf32> to vector<16x32xf32>
    %15 = arith.subf %0, %14 : vector<16x32xf32>
    %cst_8 = arith.constant 9.99999974E-6 : f32
    %16 = vector.broadcast %cst_8 : f32 to vector<16x1xf32>
    %17 = arith.addf %13, %16 : vector<16x1xf32>
    %18 = math.rsqrt %17 : vector<16x1xf32>
    %19 = vector.broadcast %18 : vector<16x1xf32> to vector<16x32xf32>
    %20 = arith.mulf %15, %19 : vector<16x32xf32>
    %21 = vector.broadcast %1 : vector<1x32xf32> to vector<16x32xf32>
    %22 = arith.mulf %20, %21 : vector<16x32xf32>
    %23 = vector.broadcast %2 : vector<1x32xf32> to vector<16x32xf32>
    %24 = arith.addf %22, %23 : vector<16x32xf32>
    %c0_9 = arith.constant 0 : index
    %c0_10 = arith.constant 0 : index
    %25 = vector.load %arg1[%c0_9, %c0_10] : memref<2x8xf32, #tpu.memory_space<vmem>>, vector<2x8xf32>
    %cst_11 = arith.constant 1.000000e+00 : f32
    %26 = vector.broadcast %cst_11 : f32 to vector<2x8xf32>
    %27 = arith.subf %26, %25 : vector<2x8xf32>
    %cst_12 = arith.constant -1.000000e+09 : f32
    %28 = vector.broadcast %cst_12 : f32 to vector<2x8xf32>
    %29 = arith.mulf %27, %28 : vector<2x8xf32>
    %30 = vector.extract_strided_slice %29 {offsets = [0, 0], sizes = [1, 8], strides = [1, 1]} : vector<2x8xf32> to vector<1x8xf32>
    %31 = vector.shape_cast %30 : vector<1x8xf32> to vector<1x1x8xf32>
    %32 = vector.extract_strided_slice %29 {offsets = [0, 0], sizes = [1, 8], strides = [1, 1]} : vector<2x8xf32> to vector<1x8xf32>
    %33 = vector.shape_cast %32 : vector<1x8xf32> to vector<1x1x8xf32>
    %34 = vector.extract_strided_slice %29 {offsets = [0, 0], sizes = [1, 8], strides = [1, 1]} : vector<2x8xf32> to vector<1x8xf32>
    %35 = vector.shape_cast %34 : vector<1x8xf32> to vector<1x1x8xf32>
    %36 = vector.extract_strided_slice %29 {offsets = [0, 0], sizes = [1, 8], strides = [1, 1]} : vector<2x8xf32> to vector<1x8xf32>
    %37 = vector.shape_cast %36 : vector<1x8xf32> to vector<1x1x8xf32>
    %38 = vector.extract_strided_slice %29 {offsets = [1, 0], sizes = [1, 8], strides = [1, 1]} : vector<2x8xf32> to vector<1x8xf32>
    %39 = vector.shape_cast %38 : vector<1x8xf32> to vector<1x1x8xf32>
    %40 = vector.extract_strided_slice %29 {offsets = [1, 0], sizes = [1, 8], strides = [1, 1]} : vector<2x8xf32> to vector<1x8xf32>
    %41 = vector.shape_cast %40 : vector<1x8xf32> to vector<1x1x8xf32>
    %42 = vector.extract_strided_slice %29 {offsets = [1, 0], sizes = [1, 8], strides = [1, 1]} : vector<2x8xf32> to vector<1x8xf32>
    %43 = vector.shape_cast %42 : vector<1x8xf32> to vector<1x1x8xf32>
    %44 = vector.extract_strided_slice %29 {offsets = [1, 0], sizes = [1, 8], strides = [1, 1]} : vector<2x8xf32> to vector<1x8xf32>
    %45 = vector.shape_cast %44 : vector<1x8xf32> to vector<1x1x8xf32>
    %46 = tpu.concatenate %31, %33, %35, %37, %39, %41, %43, %45 in 0 : vector<1x1x8xf32>, vector<1x1x8xf32>, vector<1x1x8xf32>, vector<1x1x8xf32>, vector<1x1x8xf32>, vector<1x1x8xf32>, vector<1x1x8xf32>, vector<1x1x8xf32> -> vector<8x1x8xf32>
    %c0_13 = arith.constant 0 : index
    %c0_14 = arith.constant 0 : index
    %c0_15 = arith.constant 0 : index
    %47 = vector.load %arg4[%c0_13, %c0_14, %c0_15] : memref<2x32x96xf32, #tpu.memory_space<vmem>>, vector<1x32x96xf32>
    %48 = vector.shape_cast %47 : vector<1x32x96xf32> to vector<32x96xf32>
    %cst_16 = arith.constant dense<0.000000e+00> : vector<16x96xf32>
    %49 = tpu.matmul %24, %48, %cst_16 {dimension_numbers = #tpu.dot_dimension_numbers<[1], [0], [0], [1], [0, 0, 1, 1], [], []>} : vector<16x32xf32>, vector<32x96xf32>, vector<16x96xf32> -> vector<16x96xf32>
    %c0_17 = arith.constant 0 : index
    %c0_18 = arith.constant 0 : index
    %c0_19 = arith.constant 0 : index
    %50 = vector.load %arg5[%c0_17, %c0_18, %c0_19] : memref<2x1x96xf32, #tpu.memory_space<vmem>>, vector<1x1x96xf32>
    %51 = vector.shape_cast %50 : vector<1x1x96xf32> to vector<1x96xf32>
    %52 = vector.broadcast %51 : vector<1x96xf32> to vector<16x96xf32>
    %53 = arith.addf %49, %52 : vector<16x96xf32>
    %54 = vector.extract_strided_slice %53 {offsets = [0, 0], sizes = [8, 8], strides = [1, 1]} : vector<16x96xf32> to vector<8x8xf32>
    %55 = vector.shape_cast %54 : vector<8x8xf32> to vector<1x8x8xf32>
    %56 = vector.extract_strided_slice %53 {offsets = [0, 32], sizes = [8, 8], strides = [1, 1]} : vector<16x96xf32> to vector<8x8xf32>
    %57 = vector.shape_cast %56 : vector<8x8xf32> to vector<1x8x8xf32>
    %58 = vector.extract_strided_slice %53 {offsets = [0, 64], sizes = [8, 8], strides = [1, 1]} : vector<16x96xf32> to vector<8x8xf32>
    %59 = vector.shape_cast %58 : vector<8x8xf32> to vector<1x8x8xf32>
    %60 = vector.extract_strided_slice %53 {offsets = [0, 8], sizes = [8, 8], strides = [1, 1]} : vector<16x96xf32> to vector<8x8xf32>
    %61 = vector.shape_cast %60 : vector<8x8xf32> to vector<1x8x8xf32>
    %62 = vector.extract_strided_slice %53 {offsets = [0, 40], sizes = [8, 8], strides = [1, 1]} : vector<16x96xf32> to vector<8x8xf32>
    %63 = vector.shape_cast %62 : vector<8x8xf32> to vector<1x8x8xf32>
    %64 = vector.extract_strided_slice %53 {offsets = [0, 72], sizes = [8, 8], strides = [1, 1]} : vector<16x96xf32> to vector<8x8xf32>
    %65 = vector.shape_cast %64 : vector<8x8xf32> to vector<1x8x8xf32>
    %66 = vector.extract_strided_slice %53 {offsets = [0, 16], sizes = [8, 8], strides = [1, 1]} : vector<16x96xf32> to vector<8x8xf32>
    %67 = vector.shape_cast %66 : vector<8x8xf32> to vector<1x8x8xf32>
    %68 = vector.extract_strided_slice %53 {offsets = [0, 48], sizes = [8, 8], strides = [1, 1]} : vector<16x96xf32> to vector<8x8xf32>
    %69 = vector.shape_cast %68 : vector<8x8xf32> to vector<1x8x8xf32>
    %70 = vector.extract_strided_slice %53 {offsets = [0, 80], sizes = [8, 8], strides = [1, 1]} : vector<16x96xf32> to vector<8x8xf32>
    %71 = vector.shape_cast %70 : vector<8x8xf32> to vector<1x8x8xf32>
    %72 = vector.extract_strided_slice %53 {offsets = [0, 24], sizes = [8, 8], strides = [1, 1]} : vector<16x96xf32> to vector<8x8xf32>
    %73 = vector.shape_cast %72 : vector<8x8xf32> to vector<1x8x8xf32>
    %74 = vector.extract_strided_slice %53 {offsets = [0, 56], sizes = [8, 8], strides = [1, 1]} : vector<16x96xf32> to vector<8x8xf32>
    %75 = vector.shape_cast %74 : vector<8x8xf32> to vector<1x8x8xf32>
    %76 = vector.extract_strided_slice %53 {offsets = [0, 88], sizes = [8, 8], strides = [1, 1]} : vector<16x96xf32> to vector<8x8xf32>
    %77 = vector.shape_cast %76 : vector<8x8xf32> to vector<1x8x8xf32>
    %78 = vector.extract_strided_slice %53 {offsets = [8, 0], sizes = [8, 8], strides = [1, 1]} : vector<16x96xf32> to vector<8x8xf32>
    %79 = vector.shape_cast %78 : vector<8x8xf32> to vector<1x8x8xf32>
    %80 = vector.extract_strided_slice %53 {offsets = [8, 32], sizes = [8, 8], strides = [1, 1]} : vector<16x96xf32> to vector<8x8xf32>
    %81 = vector.shape_cast %80 : vector<8x8xf32> to vector<1x8x8xf32>
    %82 = vector.extract_strided_slice %53 {offsets = [8, 64], sizes = [8, 8], strides = [1, 1]} : vector<16x96xf32> to vector<8x8xf32>
    %83 = vector.shape_cast %82 : vector<8x8xf32> to vector<1x8x8xf32>
    %84 = vector.extract_strided_slice %53 {offsets = [8, 8], sizes = [8, 8], strides = [1, 1]} : vector<16x96xf32> to vector<8x8xf32>
    %85 = vector.shape_cast %84 : vector<8x8xf32> to vector<1x8x8xf32>
    %86 = vector.extract_strided_slice %53 {offsets = [8, 40], sizes = [8, 8], strides = [1, 1]} : vector<16x96xf32> to vector<8x8xf32>
    %87 = vector.shape_cast %86 : vector<8x8xf32> to vector<1x8x8xf32>
    %88 = vector.extract_strided_slice %53 {offsets = [8, 72], sizes = [8, 8], strides = [1, 1]} : vector<16x96xf32> to vector<8x8xf32>
    %89 = vector.shape_cast %88 : vector<8x8xf32> to vector<1x8x8xf32>
    %90 = vector.extract_strided_slice %53 {offsets = [8, 16], sizes = [8, 8], strides = [1, 1]} : vector<16x96xf32> to vector<8x8xf32>
    %91 = vector.shape_cast %90 : vector<8x8xf32> to vector<1x8x8xf32>
    %92 = vector.extract_strided_slice %53 {offsets = [8, 48], sizes = [8, 8], strides = [1, 1]} : vector<16x96xf32> to vector<8x8xf32>
    %93 = vector.shape_cast %92 : vector<8x8xf32> to vector<1x8x8xf32>
    %94 = vector.extract_strided_slice %53 {offsets = [8, 80], sizes = [8, 8], strides = [1, 1]} : vector<16x96xf32> to vector<8x8xf32>
    %95 = vector.shape_cast %94 : vector<8x8xf32> to vector<1x8x8xf32>
    %96 = vector.extract_strided_slice %53 {offsets = [8, 24], sizes = [8, 8], strides = [1, 1]} : vector<16x96xf32> to vector<8x8xf32>
    %97 = vector.shape_cast %96 : vector<8x8xf32> to vector<1x8x8xf32>
    %98 = vector.extract_strided_slice %53 {offsets = [8, 56], sizes = [8, 8], strides = [1, 1]} : vector<16x96xf32> to vector<8x8xf32>
    %99 = vector.shape_cast %98 : vector<8x8xf32> to vector<1x8x8xf32>
    %100 = vector.extract_strided_slice %53 {offsets = [8, 88], sizes = [8, 8], strides = [1, 1]} : vector<16x96xf32> to vector<8x8xf32>
    %101 = vector.shape_cast %100 : vector<8x8xf32> to vector<1x8x8xf32>
    %102 = tpu.concatenate %55, %61, %67, %73, %79, %85, %91, %97 in 0 : vector<1x8x8xf32>, vector<1x8x8xf32>, vector<1x8x8xf32>, vector<1x8x8xf32>, vector<1x8x8xf32>, vector<1x8x8xf32>, vector<1x8x8xf32>, vector<1x8x8xf32> -> vector<8x8x8xf32>
    %103 = tpu.concatenate %57, %63, %69, %75, %81, %87, %93, %99 in 0 : vector<1x8x8xf32>, vector<1x8x8xf32>, vector<1x8x8xf32>, vector<1x8x8xf32>, vector<1x8x8xf32>, vector<1x8x8xf32>, vector<1x8x8xf32>, vector<1x8x8xf32> -> vector<8x8x8xf32>
    %104 = tpu.concatenate %59, %65, %71, %77, %83, %89, %95, %101 in 0 : vector<1x8x8xf32>, vector<1x8x8xf32>, vector<1x8x8xf32>, vector<1x8x8xf32>, vector<1x8x8xf32>, vector<1x8x8xf32>, vector<1x8x8xf32>, vector<1x8x8xf32> -> vector<8x8x8xf32>
    "tpu.trace_start"() <{level = 10 : i32, message = "nqd,nkd->nqk"}> : () -> ()
    %cst_20 = arith.constant dense<0.000000e+00> : vector<8x8x8xf32>
    %105 = tpu.matmul %102, %103, %cst_20 {dimension_numbers = #tpu.dot_dimension_numbers<[2], [2], [1], [1], [0, 0, 0, 1, 1, 1], [0], [0]>} : vector<8x8x8xf32>, vector<8x8x8xf32>, vector<8x8x8xf32> -> vector<8x8x8xf32>
    "tpu.trace_stop"() : () -> ()
    %cst_21 = arith.constant 0.353553385 : f32
    %106 = vector.broadcast %cst_21 : f32 to vector<8x8x8xf32>
    %107 = arith.mulf %105, %106 : vector<8x8x8xf32>
    %108 = vector.broadcast %46 : vector<8x1x8xf32> to vector<8x8x8xf32>
    %109 = arith.addf %107, %108 : vector<8x8x8xf32>
    %cst_22 = arith.constant dense<0xFF800000> : vector<8x8xf32>
    %110 = vector.multi_reduction <maximumf>, %109, %cst_22 [2] : vector<8x8x8xf32> to vector<8x8xf32>
    %111 = vector.shape_cast %110 : vector<8x8xf32> to vector<8x8x1xf32>
    %112 = vector.broadcast %111 : vector<8x8x1xf32> to vector<8x8x8xf32>
    %113 = arith.subf %109, %112 : vector<8x8x8xf32>
    %114 = math.exp %113 : vector<8x8x8xf32>
    %cst_23 = arith.constant dense<0.000000e+00> : vector<8x8xf32>
    %115 = vector.multi_reduction <add>, %114, %cst_23 [2] : vector<8x8x8xf32> to vector<8x8xf32>
    %116 = vector.shape_cast %115 : vector<8x8xf32> to vector<8x8x1xf32>
    %117 = tpu.reciprocal %116 {approx = true} : vector<8x8x1xf32> -> vector<8x8x1xf32>
    %118 = vector.broadcast %117 : vector<8x8x1xf32> to vector<8x8x8xf32>
    %119 = arith.mulf %114, %118 : vector<8x8x8xf32>
    "tpu.trace_start"() <{level = 10 : i32, message = "nqk,nkd->nqd"}> : () -> ()
    %cst_24 = arith.constant dense<0.000000e+00> : vector<8x8x8xf32>
    %120 = tpu.matmul %119, %104, %cst_24 {dimension_numbers = #tpu.dot_dimension_numbers<[2], [1], [1], [2], [0, 0, 0, 1, 1, 2], [0], [0]>} : vector<8x8x8xf32>, vector<8x8x8xf32>, vector<8x8x8xf32> -> vector<8x8x8xf32>
    "tpu.trace_stop"() : () -> ()
    %121 = vector.extract_strided_slice %120 {offsets = [0, 0, 0], sizes = [1, 8, 8], strides = [1, 1, 1]} : vector<8x8x8xf32> to vector<1x8x8xf32>
    %122 = vector.shape_cast %121 : vector<1x8x8xf32> to vector<8x8xf32>
    %123 = vector.extract_strided_slice %120 {offsets = [1, 0, 0], sizes = [1, 8, 8], strides = [1, 1, 1]} : vector<8x8x8xf32> to vector<1x8x8xf32>
    %124 = vector.shape_cast %123 : vector<1x8x8xf32> to vector<8x8xf32>
    %125 = vector.extract_strided_slice %120 {offsets = [2, 0, 0], sizes = [1, 8, 8], strides = [1, 1, 1]} : vector<8x8x8xf32> to vector<1x8x8xf32>
    %126 = vector.shape_cast %125 : vector<1x8x8xf32> to vector<8x8xf32>
    %127 = vector.extract_strided_slice %120 {offsets = [3, 0, 0], sizes = [1, 8, 8], strides = [1, 1, 1]} : vector<8x8x8xf32> to vector<1x8x8xf32>
    %128 = vector.shape_cast %127 : vector<1x8x8xf32> to vector<8x8xf32>
    %129 = tpu.concatenate %122, %124, %126, %128 in 1 : vector<8x8xf32>, vector<8x8xf32>, vector<8x8xf32>, vector<8x8xf32> -> vector<8x32xf32>
    %130 = vector.extract_strided_slice %120 {offsets = [4, 0, 0], sizes = [1, 8, 8], strides = [1, 1, 1]} : vector<8x8x8xf32> to vector<1x8x8xf32>
    %131 = vector.shape_cast %130 : vector<1x8x8xf32> to vector<8x8xf32>
    %132 = vector.extract_strided_slice %120 {offsets = [5, 0, 0], sizes = [1, 8, 8], strides = [1, 1, 1]} : vector<8x8x8xf32> to vector<1x8x8xf32>
    %133 = vector.shape_cast %132 : vector<1x8x8xf32> to vector<8x8xf32>
    %134 = vector.extract_strided_slice %120 {offsets = [6, 0, 0], sizes = [1, 8, 8], strides = [1, 1, 1]} : vector<8x8x8xf32> to vector<1x8x8xf32>
    %135 = vector.shape_cast %134 : vector<1x8x8xf32> to vector<8x8xf32>
    %136 = vector.extract_strided_slice %120 {offsets = [7, 0, 0], sizes = [1, 8, 8], strides = [1, 1, 1]} : vector<8x8x8xf32> to vector<1x8x8xf32>
    %137 = vector.shape_cast %136 : vector<1x8x8xf32> to vector<8x8xf32>
    %138 = tpu.concatenate %131, %133, %135, %137 in 1 : vector<8x8xf32>, vector<8x8xf32>, vector<8x8xf32>, vector<8x8xf32> -> vector<8x32xf32>
    %139 = tpu.concatenate %129, %138 in 0 : vector<8x32xf32>, vector<8x32xf32> -> vector<16x32xf32>
    %c0_25 = arith.constant 0 : index
    %c0_26 = arith.constant 0 : index
    %c0_27 = arith.constant 0 : index
    %140 = vector.load %arg6[%c0_25, %c0_26, %c0_27] : memref<2x32x32xf32, #tpu.memory_space<vmem>>, vector<1x32x32xf32>
    %141 = vector.shape_cast %140 : vector<1x32x32xf32> to vector<32x32xf32>
    %cst_28 = arith.constant dense<0.000000e+00> : vector<16x32xf32>
    %142 = tpu.matmul %139, %141, %cst_28 {dimension_numbers = #tpu.dot_dimension_numbers<[1], [0], [0], [1], [0, 0, 1, 1], [], []>} : vector<16x32xf32>, vector<32x32xf32>, vector<16x32xf32> -> vector<16x32xf32>
    %c0_29 = arith.constant 0 : index
    %c0_30 = arith.constant 0 : index
    %c0_31 = arith.constant 0 : index
    %143 = vector.load %arg7[%c0_29, %c0_30, %c0_31] : memref<2x1x32xf32, #tpu.memory_space<vmem>>, vector<1x1x32xf32>
    %144 = vector.shape_cast %143 : vector<1x1x32xf32> to vector<1x32xf32>
    %145 = vector.broadcast %144 : vector<1x32xf32> to vector<16x32xf32>
    %146 = arith.addf %142, %145 : vector<16x32xf32>
    %147 = arith.addf %24, %146 : vector<16x32xf32>
    %c0_32 = arith.constant 0 : index
    %c0_33 = arith.constant 0 : index
    %c0_34 = arith.constant 0 : index
    %148 = vector.load %arg8[%c0_32, %c0_33, %c0_34] : memref<2x1x32xf32, #tpu.memory_space<vmem>>, vector<1x1x32xf32>
    %149 = vector.shape_cast %148 : vector<1x1x32xf32> to vector<1x32xf32>
    %c0_35 = arith.constant 0 : index
    %c0_36 = arith.constant 0 : index
    %c0_37 = arith.constant 0 : index
    %150 = vector.load %arg9[%c0_35, %c0_36, %c0_37] : memref<2x1x32xf32, #tpu.memory_space<vmem>>, vector<1x1x32xf32>
    %151 = vector.shape_cast %150 : vector<1x1x32xf32> to vector<1x32xf32>
    %cst_38 = arith.constant dense<0.000000e+00> : vector<16xf32>
    %152 = vector.multi_reduction <add>, %147, %cst_38 [1] : vector<16x32xf32> to vector<16xf32>
    %153 = vector.shape_cast %152 : vector<16xf32> to vector<16x1xf32>
    %cst_39 = arith.constant 3.200000e+01 : f32
    %154 = vector.broadcast %cst_39 : f32 to vector<16x1xf32>
    %155 = arith.divf %153, %154 : vector<16x1xf32>
    %156 = vector.broadcast %155 : vector<16x1xf32> to vector<16x32xf32>
    %157 = arith.subf %147, %156 : vector<16x32xf32>
    %158 = arith.mulf %157, %157 : vector<16x32xf32>
    %cst_40 = arith.constant dense<0.000000e+00> : vector<16xf32>
    %159 = vector.multi_reduction <add>, %158, %cst_40 [1] : vector<16x32xf32> to vector<16xf32>
    %160 = vector.shape_cast %159 : vector<16xf32> to vector<16x1xf32>
    %cst_41 = arith.constant 3.200000e+01 : f32
    %161 = vector.broadcast %cst_41 : f32 to vector<16x1xf32>
    %162 = arith.divf %160, %161 : vector<16x1xf32>
    %163 = vector.broadcast %155 : vector<16x1xf32> to vector<16x32xf32>
    %164 = arith.subf %147, %163 : vector<16x32xf32>
    %cst_42 = arith.constant 9.99999974E-6 : f32
    %165 = vector.broadcast %cst_42 : f32 to vector<16x1xf32>
    %166 = arith.addf %162, %165 : vector<16x1xf32>
    %167 = math.rsqrt %166 : vector<16x1xf32>
    %168 = vector.broadcast %167 : vector<16x1xf32> to vector<16x32xf32>
    %169 = arith.mulf %164, %168 : vector<16x32xf32>
    %170 = vector.broadcast %149 : vector<1x32xf32> to vector<16x32xf32>
    %171 = arith.mulf %169, %170 : vector<16x32xf32>
    %172 = vector.broadcast %151 : vector<1x32xf32> to vector<16x32xf32>
    %173 = arith.addf %171, %172 : vector<16x32xf32>
    %c0_43 = arith.constant 0 : index
    %c0_44 = arith.constant 0 : index
    %c0_45 = arith.constant 0 : index
    %174 = vector.load %arg10[%c0_43, %c0_44, %c0_45] : memref<2x32x128xf32, #tpu.memory_space<vmem>>, vector<1x32x128xf32>
    %175 = vector.shape_cast %174 : vector<1x32x128xf32> to vector<32x128xf32>
    %cst_46 = arith.constant dense<0.000000e+00> : vector<16x128xf32>
    %176 = tpu.matmul %173, %175, %cst_46 {dimension_numbers = #tpu.dot_dimension_numbers<[1], [0], [0], [1], [0, 0, 1, 1], [], []>} : vector<16x32xf32>, vector<32x128xf32>, vector<16x128xf32> -> vector<16x128xf32>
    %c0_47 = arith.constant 0 : index
    %c0_48 = arith.constant 0 : index
    %c0_49 = arith.constant 0 : index
    %177 = vector.load %arg11[%c0_47, %c0_48, %c0_49] : memref<2x1x128xf32, #tpu.memory_space<vmem>>, vector<1x1x128xf32>
    %178 = vector.shape_cast %177 : vector<1x1x128xf32> to vector<1x128xf32>
    %179 = vector.broadcast %178 : vector<1x128xf32> to vector<16x128xf32>
    %180 = arith.addf %176, %179 : vector<16x128xf32>
    %cst_50 = arith.constant 5.000000e-01 : f32
    %181 = vector.broadcast %cst_50 : f32 to vector<16x128xf32>
    %182 = arith.mulf %181, %180 : vector<16x128xf32>
    %cst_51 = arith.constant 4.471500e-02 : f32
    %183 = vector.broadcast %cst_51 : f32 to vector<16x128xf32>
    %184 = arith.mulf %183, %180 : vector<16x128xf32>
    %185 = arith.mulf %184, %180 : vector<16x128xf32>
    %186 = arith.mulf %185, %180 : vector<16x128xf32>
    %187 = arith.addf %180, %186 : vector<16x128xf32>
    %cst_52 = arith.constant 0.797884583 : f32
    %188 = vector.broadcast %cst_52 : f32 to vector<16x128xf32>
    %189 = arith.mulf %188, %187 : vector<16x128xf32>
    %190 = math.tanh %189 : vector<16x128xf32>
    %cst_53 = arith.constant 1.000000e+00 : f32
    %191 = vector.broadcast %cst_53 : f32 to vector<16x128xf32>
    %192 = arith.addf %191, %190 : vector<16x128xf32>
    %193 = arith.mulf %182, %192 : vector<16x128xf32>
    %c0_54 = arith.constant 0 : index
    %c0_55 = arith.constant 0 : index
    %c0_56 = arith.constant 0 : index
    %194 = vector.load %arg12[%c0_54, %c0_55, %c0_56] : memref<2x128x32xf32, #tpu.memory_space<vmem>>, vector<1x128x32xf32>
    %195 = vector.shape_cast %194 : vector<1x128x32xf32> to vector<128x32xf32>
    %cst_57 = arith.constant dense<0.000000e+00> : vector<16x32xf32>
    %196 = tpu.matmul %193, %195, %cst_57 {dimension_numbers = #tpu.dot_dimension_numbers<[1], [0], [0], [1], [0, 0, 1, 1], [], []>} : vector<16x128xf32>, vector<128x32xf32>, vector<16x32xf32> -> vector<16x32xf32>
    %c0_58 = arith.constant 0 : index
    %c0_59 = arith.constant 0 : index
    %c0_60 = arith.constant 0 : index
    %197 = vector.load %arg13[%c0_58, %c0_59, %c0_60] : memref<2x1x32xf32, #tpu.memory_space<vmem>>, vector<1x1x32xf32>
    %198 = vector.shape_cast %197 : vector<1x1x32xf32> to vector<1x32xf32>
    %199 = vector.broadcast %198 : vector<1x32xf32> to vector<16x32xf32>
    %200 = arith.addf %196, %199 : vector<16x32xf32>
    %201 = arith.addf %173, %200 : vector<16x32xf32>
    %c0_61 = arith.constant 0 : index
    %c0_62 = arith.constant 0 : index
    %c0_63 = arith.constant 0 : index
    %202 = vector.load %arg14[%c0_61, %c0_62, %c0_63] : memref<2x1x32xf32, #tpu.memory_space<vmem>>, vector<1x1x32xf32>
    %203 = vector.shape_cast %202 : vector<1x1x32xf32> to vector<1x32xf32>
    %c0_64 = arith.constant 0 : index
    %c0_65 = arith.constant 0 : index
    %c0_66 = arith.constant 0 : index
    %204 = vector.load %arg15[%c0_64, %c0_65, %c0_66] : memref<2x1x32xf32, #tpu.memory_space<vmem>>, vector<1x1x32xf32>
    %205 = vector.shape_cast %204 : vector<1x1x32xf32> to vector<1x32xf32>
    %cst_67 = arith.constant dense<0.000000e+00> : vector<16xf32>
    %206 = vector.multi_reduction <add>, %201, %cst_67 [1] : vector<16x32xf32> to vector<16xf32>
    %207 = vector.shape_cast %206 : vector<16xf32> to vector<16x1xf32>
    %cst_68 = arith.constant 3.200000e+01 : f32
    %208 = vector.broadcast %cst_68 : f32 to vector<16x1xf32>
    %209 = arith.divf %207, %208 : vector<16x1xf32>
    %210 = vector.broadcast %209 : vector<16x1xf32> to vector<16x32xf32>
    %211 = arith.subf %201, %210 : vector<16x32xf32>
    %212 = arith.mulf %211, %211 : vector<16x32xf32>
    %cst_69 = arith.constant dense<0.000000e+00> : vector<16xf32>
    %213 = vector.multi_reduction <add>, %212, %cst_69 [1] : vector<16x32xf32> to vector<16xf32>
    %214 = vector.shape_cast %213 : vector<16xf32> to vector<16x1xf32>
    %cst_70 = arith.constant 3.200000e+01 : f32
    %215 = vector.broadcast %cst_70 : f32 to vector<16x1xf32>
    %216 = arith.divf %214, %215 : vector<16x1xf32>
    %217 = vector.broadcast %209 : vector<16x1xf32> to vector<16x32xf32>
    %218 = arith.subf %201, %217 : vector<16x32xf32>
    %cst_71 = arith.constant 9.99999974E-6 : f32
    %219 = vector.broadcast %cst_71 : f32 to vector<16x1xf32>
    %220 = arith.addf %216, %219 : vector<16x1xf32>
    %221 = math.rsqrt %220 : vector<16x1xf32>
    %222 = vector.broadcast %221 : vector<16x1xf32> to vector<16x32xf32>
    %223 = arith.mulf %218, %222 : vector<16x32xf32>
    %224 = vector.broadcast %203 : vector<1x32xf32> to vector<16x32xf32>
    %225 = arith.mulf %223, %224 : vector<16x32xf32>
    %226 = vector.broadcast %205 : vector<1x32xf32> to vector<16x32xf32>
    %227 = arith.addf %225, %226 : vector<16x32xf32>
    %c1 = arith.constant 1 : index
    %c0_72 = arith.constant 0 : index
    %c0_73 = arith.constant 0 : index
    %228 = vector.load %arg4[%c1, %c0_72, %c0_73] : memref<2x32x96xf32, #tpu.memory_space<vmem>>, vector<1x32x96xf32>
    %229 = vector.shape_cast %228 : vector<1x32x96xf32> to vector<32x96xf32>
    %cst_74 = arith.constant dense<0.000000e+00> : vector<16x96xf32>
    %230 = tpu.matmul %227, %229, %cst_74 {dimension_numbers = #tpu.dot_dimension_numbers<[1], [0], [0], [1], [0, 0, 1, 1], [], []>} : vector<16x32xf32>, vector<32x96xf32>, vector<16x96xf32> -> vector<16x96xf32>
    %c1_75 = arith.constant 1 : index
    %c0_76 = arith.constant 0 : index
    %c0_77 = arith.constant 0 : index
    %231 = vector.load %arg5[%c1_75, %c0_76, %c0_77] : memref<2x1x96xf32, #tpu.memory_space<vmem>>, vector<1x1x96xf32>
    %232 = vector.shape_cast %231 : vector<1x1x96xf32> to vector<1x96xf32>
    %233 = vector.broadcast %232 : vector<1x96xf32> to vector<16x96xf32>
    %234 = arith.addf %230, %233 : vector<16x96xf32>
    %235 = vector.extract_strided_slice %234 {offsets = [0, 0], sizes = [8, 8], strides = [1, 1]} : vector<16x96xf32> to vector<8x8xf32>
    %236 = vector.shape_cast %235 : vector<8x8xf32> to vector<1x8x8xf32>
    %237 = vector.extract_strided_slice %234 {offsets = [0, 32], sizes = [8, 8], strides = [1, 1]} : vector<16x96xf32> to vector<8x8xf32>
    %238 = vector.shape_cast %237 : vector<8x8xf32> to vector<1x8x8xf32>
    %239 = vector.extract_strided_slice %234 {offsets = [0, 64], sizes = [8, 8], strides = [1, 1]} : vector<16x96xf32> to vector<8x8xf32>
    %240 = vector.shape_cast %239 : vector<8x8xf32> to vector<1x8x8xf32>
    %241 = vector.extract_strided_slice %234 {offsets = [0, 8], sizes = [8, 8], strides = [1, 1]} : vector<16x96xf32> to vector<8x8xf32>
    %242 = vector.shape_cast %241 : vector<8x8xf32> to vector<1x8x8xf32>
    %243 = vector.extract_strided_slice %234 {offsets = [0, 40], sizes = [8, 8], strides = [1, 1]} : vector<16x96xf32> to vector<8x8xf32>
    %244 = vector.shape_cast %243 : vector<8x8xf32> to vector<1x8x8xf32>
    %245 = vector.extract_strided_slice %234 {offsets = [0, 72], sizes = [8, 8], strides = [1, 1]} : vector<16x96xf32> to vector<8x8xf32>
    %246 = vector.shape_cast %245 : vector<8x8xf32> to vector<1x8x8xf32>
    %247 = vector.extract_strided_slice %234 {offsets = [0, 16], sizes = [8, 8], strides = [1, 1]} : vector<16x96xf32> to vector<8x8xf32>
    %248 = vector.shape_cast %247 : vector<8x8xf32> to vector<1x8x8xf32>
    %249 = vector.extract_strided_slice %234 {offsets = [0, 48], sizes = [8, 8], strides = [1, 1]} : vector<16x96xf32> to vector<8x8xf32>
    %250 = vector.shape_cast %249 : vector<8x8xf32> to vector<1x8x8xf32>
    %251 = vector.extract_strided_slice %234 {offsets = [0, 80], sizes = [8, 8], strides = [1, 1]} : vector<16x96xf32> to vector<8x8xf32>
    %252 = vector.shape_cast %251 : vector<8x8xf32> to vector<1x8x8xf32>
    %253 = vector.extract_strided_slice %234 {offsets = [0, 24], sizes = [8, 8], strides = [1, 1]} : vector<16x96xf32> to vector<8x8xf32>
    %254 = vector.shape_cast %253 : vector<8x8xf32> to vector<1x8x8xf32>
    %255 = vector.extract_strided_slice %234 {offsets = [0, 56], sizes = [8, 8], strides = [1, 1]} : vector<16x96xf32> to vector<8x8xf32>
    %256 = vector.shape_cast %255 : vector<8x8xf32> to vector<1x8x8xf32>
    %257 = vector.extract_strided_slice %234 {offsets = [0, 88], sizes = [8, 8], strides = [1, 1]} : vector<16x96xf32> to vector<8x8xf32>
    %258 = vector.shape_cast %257 : vector<8x8xf32> to vector<1x8x8xf32>
    %259 = vector.extract_strided_slice %234 {offsets = [8, 0], sizes = [8, 8], strides = [1, 1]} : vector<16x96xf32> to vector<8x8xf32>
    %260 = vector.shape_cast %259 : vector<8x8xf32> to vector<1x8x8xf32>
    %261 = vector.extract_strided_slice %234 {offsets = [8, 32], sizes = [8, 8], strides = [1, 1]} : vector<16x96xf32> to vector<8x8xf32>
    %262 = vector.shape_cast %261 : vector<8x8xf32> to vector<1x8x8xf32>
    %263 = vector.extract_strided_slice %234 {offsets = [8, 64], sizes = [8, 8], strides = [1, 1]} : vector<16x96xf32> to vector<8x8xf32>
    %264 = vector.shape_cast %263 : vector<8x8xf32> to vector<1x8x8xf32>
    %265 = vector.extract_strided_slice %234 {offsets = [8, 8], sizes = [8, 8], strides = [1, 1]} : vector<16x96xf32> to vector<8x8xf32>
    %266 = vector.shape_cast %265 : vector<8x8xf32> to vector<1x8x8xf32>
    %267 = vector.extract_strided_slice %234 {offsets = [8, 40], sizes = [8, 8], strides = [1, 1]} : vector<16x96xf32> to vector<8x8xf32>
    %268 = vector.shape_cast %267 : vector<8x8xf32> to vector<1x8x8xf32>
    %269 = vector.extract_strided_slice %234 {offsets = [8, 72], sizes = [8, 8], strides = [1, 1]} : vector<16x96xf32> to vector<8x8xf32>
    %270 = vector.shape_cast %269 : vector<8x8xf32> to vector<1x8x8xf32>
    %271 = vector.extract_strided_slice %234 {offsets = [8, 16], sizes = [8, 8], strides = [1, 1]} : vector<16x96xf32> to vector<8x8xf32>
    %272 = vector.shape_cast %271 : vector<8x8xf32> to vector<1x8x8xf32>
    %273 = vector.extract_strided_slice %234 {offsets = [8, 48], sizes = [8, 8], strides = [1, 1]} : vector<16x96xf32> to vector<8x8xf32>
    %274 = vector.shape_cast %273 : vector<8x8xf32> to vector<1x8x8xf32>
    %275 = vector.extract_strided_slice %234 {offsets = [8, 80], sizes = [8, 8], strides = [1, 1]} : vector<16x96xf32> to vector<8x8xf32>
    %276 = vector.shape_cast %275 : vector<8x8xf32> to vector<1x8x8xf32>
    %277 = vector.extract_strided_slice %234 {offsets = [8, 24], sizes = [8, 8], strides = [1, 1]} : vector<16x96xf32> to vector<8x8xf32>
    %278 = vector.shape_cast %277 : vector<8x8xf32> to vector<1x8x8xf32>
    %279 = vector.extract_strided_slice %234 {offsets = [8, 56], sizes = [8, 8], strides = [1, 1]} : vector<16x96xf32> to vector<8x8xf32>
    %280 = vector.shape_cast %279 : vector<8x8xf32> to vector<1x8x8xf32>
    %281 = vector.extract_strided_slice %234 {offsets = [8, 88], sizes = [8, 8], strides = [1, 1]} : vector<16x96xf32> to vector<8x8xf32>
    %282 = vector.shape_cast %281 : vector<8x8xf32> to vector<1x8x8xf32>
    %283 = tpu.concatenate %236, %242, %248, %254, %260, %266, %272, %278 in 0 : vector<1x8x8xf32>, vector<1x8x8xf32>, vector<1x8x8xf32>, vector<1x8x8xf32>, vector<1x8x8xf32>, vector<1x8x8xf32>, vector<1x8x8xf32>, vector<1x8x8xf32> -> vector<8x8x8xf32>
    %284 = tpu.concatenate %238, %244, %250, %256, %262, %268, %274, %280 in 0 : vector<1x8x8xf32>, vector<1x8x8xf32>, vector<1x8x8xf32>, vector<1x8x8xf32>, vector<1x8x8xf32>, vector<1x8x8xf32>, vector<1x8x8xf32>, vector<1x8x8xf32> -> vector<8x8x8xf32>
    %285 = tpu.concatenate %240, %246, %252, %258, %264, %270, %276, %282 in 0 : vector<1x8x8xf32>, vector<1x8x8xf32>, vector<1x8x8xf32>, vector<1x8x8xf32>, vector<1x8x8xf32>, vector<1x8x8xf32>, vector<1x8x8xf32>, vector<1x8x8xf32> -> vector<8x8x8xf32>
    "tpu.trace_start"() <{level = 10 : i32, message = "nqd,nkd->nqk"}> : () -> ()
    %cst_78 = arith.constant dense<0.000000e+00> : vector<8x8x8xf32>
    %286 = tpu.matmul %283, %284, %cst_78 {dimension_numbers = #tpu.dot_dimension_numbers<[2], [2], [1], [1], [0, 0, 0, 1, 1, 1], [0], [0]>} : vector<8x8x8xf32>, vector<8x8x8xf32>, vector<8x8x8xf32> -> vector<8x8x8xf32>
    "tpu.trace_stop"() : () -> ()
    %cst_79 = arith.constant 0.353553385 : f32
    %287 = vector.broadcast %cst_79 : f32 to vector<8x8x8xf32>
    %288 = arith.mulf %286, %287 : vector<8x8x8xf32>
    %289 = vector.broadcast %46 : vector<8x1x8xf32> to vector<8x8x8xf32>
    %290 = arith.addf %288, %289 : vector<8x8x8xf32>
    %cst_80 = arith.constant dense<0xFF800000> : vector<8x8xf32>
    %291 = vector.multi_reduction <maximumf>, %290, %cst_80 [2] : vector<8x8x8xf32> to vector<8x8xf32>
    %292 = vector.shape_cast %291 : vector<8x8xf32> to vector<8x8x1xf32>
    %293 = vector.broadcast %292 : vector<8x8x1xf32> to vector<8x8x8xf32>
    %294 = arith.subf %290, %293 : vector<8x8x8xf32>
    %295 = math.exp %294 : vector<8x8x8xf32>
    %cst_81 = arith.constant dense<0.000000e+00> : vector<8x8xf32>
    %296 = vector.multi_reduction <add>, %295, %cst_81 [2] : vector<8x8x8xf32> to vector<8x8xf32>
    %297 = vector.shape_cast %296 : vector<8x8xf32> to vector<8x8x1xf32>
    %298 = tpu.reciprocal %297 {approx = true} : vector<8x8x1xf32> -> vector<8x8x1xf32>
    %299 = vector.broadcast %298 : vector<8x8x1xf32> to vector<8x8x8xf32>
    %300 = arith.mulf %295, %299 : vector<8x8x8xf32>
    "tpu.trace_start"() <{level = 10 : i32, message = "nqk,nkd->nqd"}> : () -> ()
    %cst_82 = arith.constant dense<0.000000e+00> : vector<8x8x8xf32>
    %301 = tpu.matmul %300, %285, %cst_82 {dimension_numbers = #tpu.dot_dimension_numbers<[2], [1], [1], [2], [0, 0, 0, 1, 1, 2], [0], [0]>} : vector<8x8x8xf32>, vector<8x8x8xf32>, vector<8x8x8xf32> -> vector<8x8x8xf32>
    "tpu.trace_stop"() : () -> ()
    %302 = vector.extract_strided_slice %301 {offsets = [0, 0, 0], sizes = [1, 8, 8], strides = [1, 1, 1]} : vector<8x8x8xf32> to vector<1x8x8xf32>
    %303 = vector.shape_cast %302 : vector<1x8x8xf32> to vector<8x8xf32>
    %304 = vector.extract_strided_slice %301 {offsets = [1, 0, 0], sizes = [1, 8, 8], strides = [1, 1, 1]} : vector<8x8x8xf32> to vector<1x8x8xf32>
    %305 = vector.shape_cast %304 : vector<1x8x8xf32> to vector<8x8xf32>
    %306 = vector.extract_strided_slice %301 {offsets = [2, 0, 0], sizes = [1, 8, 8], strides = [1, 1, 1]} : vector<8x8x8xf32> to vector<1x8x8xf32>
    %307 = vector.shape_cast %306 : vector<1x8x8xf32> to vector<8x8xf32>
    %308 = vector.extract_strided_slice %301 {offsets = [3, 0, 0], sizes = [1, 8, 8], strides = [1, 1, 1]} : vector<8x8x8xf32> to vector<1x8x8xf32>
    %309 = vector.shape_cast %308 : vector<1x8x8xf32> to vector<8x8xf32>
    %310 = tpu.concatenate %303, %305, %307, %309 in 1 : vector<8x8xf32>, vector<8x8xf32>, vector<8x8xf32>, vector<8x8xf32> -> vector<8x32xf32>
    %311 = vector.extract_strided_slice %301 {offsets = [4, 0, 0], sizes = [1, 8, 8], strides = [1, 1, 1]} : vector<8x8x8xf32> to vector<1x8x8xf32>
    %312 = vector.shape_cast %311 : vector<1x8x8xf32> to vector<8x8xf32>
    %313 = vector.extract_strided_slice %301 {offsets = [5, 0, 0], sizes = [1, 8, 8], strides = [1, 1, 1]} : vector<8x8x8xf32> to vector<1x8x8xf32>
    %314 = vector.shape_cast %313 : vector<1x8x8xf32> to vector<8x8xf32>
    %315 = vector.extract_strided_slice %301 {offsets = [6, 0, 0], sizes = [1, 8, 8], strides = [1, 1, 1]} : vector<8x8x8xf32> to vector<1x8x8xf32>
    %316 = vector.shape_cast %315 : vector<1x8x8xf32> to vector<8x8xf32>
    %317 = vector.extract_strided_slice %301 {offsets = [7, 0, 0], sizes = [1, 8, 8], strides = [1, 1, 1]} : vector<8x8x8xf32> to vector<1x8x8xf32>
    %318 = vector.shape_cast %317 : vector<1x8x8xf32> to vector<8x8xf32>
    %319 = tpu.concatenate %312, %314, %316, %318 in 1 : vector<8x8xf32>, vector<8x8xf32>, vector<8x8xf32>, vector<8x8xf32> -> vector<8x32xf32>
    %320 = tpu.concatenate %310, %319 in 0 : vector<8x32xf32>, vector<8x32xf32> -> vector<16x32xf32>
    %c1_83 = arith.constant 1 : index
    %c0_84 = arith.constant 0 : index
    %c0_85 = arith.constant 0 : index
    %321 = vector.load %arg6[%c1_83, %c0_84, %c0_85] : memref<2x32x32xf32, #tpu.memory_space<vmem>>, vector<1x32x32xf32>
    %322 = vector.shape_cast %321 : vector<1x32x32xf32> to vector<32x32xf32>
    %cst_86 = arith.constant dense<0.000000e+00> : vector<16x32xf32>
    %323 = tpu.matmul %320, %322, %cst_86 {dimension_numbers = #tpu.dot_dimension_numbers<[1], [0], [0], [1], [0, 0, 1, 1], [], []>} : vector<16x32xf32>, vector<32x32xf32>, vector<16x32xf32> -> vector<16x32xf32>
    %c1_87 = arith.constant 1 : index
    %c0_88 = arith.constant 0 : index
    %c0_89 = arith.constant 0 : index
    %324 = vector.load %arg7[%c1_87, %c0_88, %c0_89] : memref<2x1x32xf32, #tpu.memory_space<vmem>>, vector<1x1x32xf32>
    %325 = vector.shape_cast %324 : vector<1x1x32xf32> to vector<1x32xf32>
    %326 = vector.broadcast %325 : vector<1x32xf32> to vector<16x32xf32>
    %327 = arith.addf %323, %326 : vector<16x32xf32>
    %328 = arith.addf %227, %327 : vector<16x32xf32>
    %c1_90 = arith.constant 1 : index
    %c0_91 = arith.constant 0 : index
    %c0_92 = arith.constant 0 : index
    %329 = vector.load %arg8[%c1_90, %c0_91, %c0_92] : memref<2x1x32xf32, #tpu.memory_space<vmem>>, vector<1x1x32xf32>
    %330 = vector.shape_cast %329 : vector<1x1x32xf32> to vector<1x32xf32>
    %c1_93 = arith.constant 1 : index
    %c0_94 = arith.constant 0 : index
    %c0_95 = arith.constant 0 : index
    %331 = vector.load %arg9[%c1_93, %c0_94, %c0_95] : memref<2x1x32xf32, #tpu.memory_space<vmem>>, vector<1x1x32xf32>
    %332 = vector.shape_cast %331 : vector<1x1x32xf32> to vector<1x32xf32>
    %cst_96 = arith.constant dense<0.000000e+00> : vector<16xf32>
    %333 = vector.multi_reduction <add>, %328, %cst_96 [1] : vector<16x32xf32> to vector<16xf32>
    %334 = vector.shape_cast %333 : vector<16xf32> to vector<16x1xf32>
    %cst_97 = arith.constant 3.200000e+01 : f32
    %335 = vector.broadcast %cst_97 : f32 to vector<16x1xf32>
    %336 = arith.divf %334, %335 : vector<16x1xf32>
    %337 = vector.broadcast %336 : vector<16x1xf32> to vector<16x32xf32>
    %338 = arith.subf %328, %337 : vector<16x32xf32>
    %339 = arith.mulf %338, %338 : vector<16x32xf32>
    %cst_98 = arith.constant dense<0.000000e+00> : vector<16xf32>
    %340 = vector.multi_reduction <add>, %339, %cst_98 [1] : vector<16x32xf32> to vector<16xf32>
    %341 = vector.shape_cast %340 : vector<16xf32> to vector<16x1xf32>
    %cst_99 = arith.constant 3.200000e+01 : f32
    %342 = vector.broadcast %cst_99 : f32 to vector<16x1xf32>
    %343 = arith.divf %341, %342 : vector<16x1xf32>
    %344 = vector.broadcast %336 : vector<16x1xf32> to vector<16x32xf32>
    %345 = arith.subf %328, %344 : vector<16x32xf32>
    %cst_100 = arith.constant 9.99999974E-6 : f32
    %346 = vector.broadcast %cst_100 : f32 to vector<16x1xf32>
    %347 = arith.addf %343, %346 : vector<16x1xf32>
    %348 = math.rsqrt %347 : vector<16x1xf32>
    %349 = vector.broadcast %348 : vector<16x1xf32> to vector<16x32xf32>
    %350 = arith.mulf %345, %349 : vector<16x32xf32>
    %351 = vector.broadcast %330 : vector<1x32xf32> to vector<16x32xf32>
    %352 = arith.mulf %350, %351 : vector<16x32xf32>
    %353 = vector.broadcast %332 : vector<1x32xf32> to vector<16x32xf32>
    %354 = arith.addf %352, %353 : vector<16x32xf32>
    %c1_101 = arith.constant 1 : index
    %c0_102 = arith.constant 0 : index
    %c0_103 = arith.constant 0 : index
    %355 = vector.load %arg10[%c1_101, %c0_102, %c0_103] : memref<2x32x128xf32, #tpu.memory_space<vmem>>, vector<1x32x128xf32>
    %356 = vector.shape_cast %355 : vector<1x32x128xf32> to vector<32x128xf32>
    %cst_104 = arith.constant dense<0.000000e+00> : vector<16x128xf32>
    %357 = tpu.matmul %354, %356, %cst_104 {dimension_numbers = #tpu.dot_dimension_numbers<[1], [0], [0], [1], [0, 0, 1, 1], [], []>} : vector<16x32xf32>, vector<32x128xf32>, vector<16x128xf32> -> vector<16x128xf32>
    %c1_105 = arith.constant 1 : index
    %c0_106 = arith.constant 0 : index
    %c0_107 = arith.constant 0 : index
    %358 = vector.load %arg11[%c1_105, %c0_106, %c0_107] : memref<2x1x128xf32, #tpu.memory_space<vmem>>, vector<1x1x128xf32>
    %359 = vector.shape_cast %358 : vector<1x1x128xf32> to vector<1x128xf32>
    %360 = vector.broadcast %359 : vector<1x128xf32> to vector<16x128xf32>
    %361 = arith.addf %357, %360 : vector<16x128xf32>
    %cst_108 = arith.constant 5.000000e-01 : f32
    %362 = vector.broadcast %cst_108 : f32 to vector<16x128xf32>
    %363 = arith.mulf %362, %361 : vector<16x128xf32>
    %cst_109 = arith.constant 4.471500e-02 : f32
    %364 = vector.broadcast %cst_109 : f32 to vector<16x128xf32>
    %365 = arith.mulf %364, %361 : vector<16x128xf32>
    %366 = arith.mulf %365, %361 : vector<16x128xf32>
    %367 = arith.mulf %366, %361 : vector<16x128xf32>
    %368 = arith.addf %361, %367 : vector<16x128xf32>
    %cst_110 = arith.constant 0.797884583 : f32
    %369 = vector.broadcast %cst_110 : f32 to vector<16x128xf32>
    %370 = arith.mulf %369, %368 : vector<16x128xf32>
    %371 = math.tanh %370 : vector<16x128xf32>
    %cst_111 = arith.constant 1.000000e+00 : f32
    %372 = vector.broadcast %cst_111 : f32 to vector<16x128xf32>
    %373 = arith.addf %372, %371 : vector<16x128xf32>
    %374 = arith.mulf %363, %373 : vector<16x128xf32>
    %c1_112 = arith.constant 1 : index
    %c0_113 = arith.constant 0 : index
    %c0_114 = arith.constant 0 : index
    %375 = vector.load %arg12[%c1_112, %c0_113, %c0_114] : memref<2x128x32xf32, #tpu.memory_space<vmem>>, vector<1x128x32xf32>
    %376 = vector.shape_cast %375 : vector<1x128x32xf32> to vector<128x32xf32>
    %cst_115 = arith.constant dense<0.000000e+00> : vector<16x32xf32>
    %377 = tpu.matmul %374, %376, %cst_115 {dimension_numbers = #tpu.dot_dimension_numbers<[1], [0], [0], [1], [0, 0, 1, 1], [], []>} : vector<16x128xf32>, vector<128x32xf32>, vector<16x32xf32> -> vector<16x32xf32>
    %c1_116 = arith.constant 1 : index
    %c0_117 = arith.constant 0 : index
    %c0_118 = arith.constant 0 : index
    %378 = vector.load %arg13[%c1_116, %c0_117, %c0_118] : memref<2x1x32xf32, #tpu.memory_space<vmem>>, vector<1x1x32xf32>
    %379 = vector.shape_cast %378 : vector<1x1x32xf32> to vector<1x32xf32>
    %380 = vector.broadcast %379 : vector<1x32xf32> to vector<16x32xf32>
    %381 = arith.addf %377, %380 : vector<16x32xf32>
    %382 = arith.addf %354, %381 : vector<16x32xf32>
    %c1_119 = arith.constant 1 : index
    %c0_120 = arith.constant 0 : index
    %c0_121 = arith.constant 0 : index
    %383 = vector.load %arg14[%c1_119, %c0_120, %c0_121] : memref<2x1x32xf32, #tpu.memory_space<vmem>>, vector<1x1x32xf32>
    %384 = vector.shape_cast %383 : vector<1x1x32xf32> to vector<1x32xf32>
    %c1_122 = arith.constant 1 : index
    %c0_123 = arith.constant 0 : index
    %c0_124 = arith.constant 0 : index
    %385 = vector.load %arg15[%c1_122, %c0_123, %c0_124] : memref<2x1x32xf32, #tpu.memory_space<vmem>>, vector<1x1x32xf32>
    %386 = vector.shape_cast %385 : vector<1x1x32xf32> to vector<1x32xf32>
    %cst_125 = arith.constant dense<0.000000e+00> : vector<16xf32>
    %387 = vector.multi_reduction <add>, %382, %cst_125 [1] : vector<16x32xf32> to vector<16xf32>
    %388 = vector.shape_cast %387 : vector<16xf32> to vector<16x1xf32>
    %cst_126 = arith.constant 3.200000e+01 : f32
    %389 = vector.broadcast %cst_126 : f32 to vector<16x1xf32>
    %390 = arith.divf %388, %389 : vector<16x1xf32>
    %391 = vector.broadcast %390 : vector<16x1xf32> to vector<16x32xf32>
    %392 = arith.subf %382, %391 : vector<16x32xf32>
    %393 = arith.mulf %392, %392 : vector<16x32xf32>
    %cst_127 = arith.constant dense<0.000000e+00> : vector<16xf32>
    %394 = vector.multi_reduction <add>, %393, %cst_127 [1] : vector<16x32xf32> to vector<16xf32>
    %395 = vector.shape_cast %394 : vector<16xf32> to vector<16x1xf32>
    %cst_128 = arith.constant 3.200000e+01 : f32
    %396 = vector.broadcast %cst_128 : f32 to vector<16x1xf32>
    %397 = arith.divf %395, %396 : vector<16x1xf32>
    %398 = vector.broadcast %390 : vector<16x1xf32> to vector<16x32xf32>
    %399 = arith.subf %382, %398 : vector<16x32xf32>
    %cst_129 = arith.constant 9.99999974E-6 : f32
    %400 = vector.broadcast %cst_129 : f32 to vector<16x1xf32>
    %401 = arith.addf %397, %400 : vector<16x1xf32>
    %402 = math.rsqrt %401 : vector<16x1xf32>
    %403 = vector.broadcast %402 : vector<16x1xf32> to vector<16x32xf32>
    %404 = arith.mulf %399, %403 : vector<16x32xf32>
    %405 = vector.broadcast %384 : vector<1x32xf32> to vector<16x32xf32>
    %406 = arith.mulf %404, %405 : vector<16x32xf32>
    %407 = vector.broadcast %386 : vector<1x32xf32> to vector<16x32xf32>
    %408 = arith.addf %406, %407 : vector<16x32xf32>
    %409 = vector.extract_strided_slice %408 {offsets = [0, 0], sizes = [1, 32], strides = [1, 1]} : vector<16x32xf32> to vector<1x32xf32>
    %410 = vector.extract_strided_slice %408 {offsets = [8, 0], sizes = [1, 32], strides = [1, 1]} : vector<16x32xf32> to vector<1x32xf32>
    %411 = tpu.concatenate %409, %410 in 0 : vector<1x32xf32>, vector<1x32xf32> -> vector<2x32xf32>
    %c0_130 = arith.constant 0 : index
    %c0_131 = arith.constant 0 : index
    %412 = vector.load %arg16[%c0_130, %c0_131] : memref<32x32xf32, #tpu.memory_space<vmem>>, vector<32x32xf32>
    %cst_132 = arith.constant dense<0.000000e+00> : vector<2x32xf32>
    %413 = tpu.matmul %411, %412, %cst_132 {dimension_numbers = #tpu.dot_dimension_numbers<[1], [0], [0], [1], [0, 0, 1, 1], [], []>} : vector<2x32xf32>, vector<32x32xf32>, vector<2x32xf32> -> vector<2x32xf32>
    %c0_133 = arith.constant 0 : index
    %c0_134 = arith.constant 0 : index
    %414 = vector.load %arg17[%c0_133, %c0_134] : memref<1x32xf32, #tpu.memory_space<vmem>>, vector<1x32xf32>
    %415 = vector.broadcast %414 : vector<1x32xf32> to vector<2x32xf32>
    %416 = arith.addf %413, %415 : vector<2x32xf32>
    %417 = math.tanh %416 : vector<2x32xf32>
    %c0_135 = arith.constant 0 : index
    %c0_136 = arith.constant 0 : index
    %418 = vector.load %arg18[%c0_135, %c0_136] : memref<32x2xf32, #tpu.memory_space<vmem>>, vector<32x2xf32>
    %cst_137 = arith.constant dense<0.000000e+00> : vector<2x2xf32>
    %419 = tpu.matmul %417, %418, %cst_137 {dimension_numbers = #tpu.dot_dimension_numbers<[1], [0], [0], [1], [0, 0, 1, 1], [], []>} : vector<2x32xf32>, vector<32x2xf32>, vector<2x2xf32> -> vector<2x2xf32>
    %c0_138 = arith.constant 0 : index
    %c0_139 = arith.constant 0 : index
    %420 = vector.load %arg19[%c0_138, %c0_139] : memref<1x2xf32, #tpu.memory_space<vmem>>, vector<1x2xf32>
    %421 = vector.broadcast %420 : vector<1x2xf32> to vector<2x2xf32>
    %422 = arith.addf %419, %421 : vector<2x2xf32>
    %cst_140 = arith.constant dense<0xFF800000> : vector<2xf32>
    %423 = vector.multi_reduction <maximumf>, %422, %cst_140 [1] : vector<2x2xf32> to vector<2xf32>
    %424 = vector.shape_cast %423 : vector<2xf32> to vector<2x1xf32>
    %425 = vector.broadcast %424 : vector<2x1xf32> to vector<2x2xf32>
    %426 = arith.subf %422, %425 : vector<2x2xf32>
    %427 = math.exp %426 : vector<2x2xf32>
    %cst_141 = arith.constant dense<0.000000e+00> : vector<2xf32>
    %428 = vector.multi_reduction <add>, %427, %cst_141 [1] : vector<2x2xf32> to vector<2xf32>
    %429 = vector.shape_cast %428 : vector<2xf32> to vector<2x1xf32>
    %430 = tpu.reciprocal %429 : vector<2x1xf32> -> vector<2x1xf32>
    %431 = vector.broadcast %430 : vector<2x1xf32> to vector<2x2xf32>
    %432 = arith.mulf %427, %431 : vector<2x2xf32>
    %c0_142 = arith.constant 0 : index
    %c0_143 = arith.constant 0 : index
    %433 = vector.load %arg20[%c0_142, %c0_143] : memref<2x2xf32, #tpu.memory_space<vmem>>, vector<2x2xf32>
    tpu.vector_store %arg20[%c0_142, %c0_143], %432 {strides = array<i32>} : memref<2x2xf32, #tpu.memory_space<vmem>>, vector<2x2xf32>,
    return
  }
}

</mosaic_0001>

<bundles_post_ra>
// kernel: codebert_forward.1
= control target key start
LH: loop header
LB: loop body
LE: loop exit
PB: predicated region body
PF: predicated region fallthrough
CT: control target
= control target key end

     0   :  { %s5731_s0 = inlined_call_operand.vmem [shape: f32[16,32], index: 0, kind: input, shape index: {}]   ;;  %s5732_s1 = inlined_call_operand.vmem [shape: f32[2,8], index: 1, kind: input, shape index: {}]   ;;  %s5733_s2 = inlined_call_operand.vmem [shape: f32[1,32], index: 2, kind: input, shape index: {}]   ;;  %s5734_s3 = inlined_call_operand.vmem [shape: f32[1,32], index: 3, kind: input, shape index: {}]   ;;  %s5735_s4 = inlined_call_operand.vmem [shape: f32[2,32,96], index: 4, kind: input, shape index: {}]   ;;  %s5736_s5 = inlined_call_operand.vmem [shape: f32[2,1,96], index: 5, kind: input, shape index: {}]   ;;  %s5737_s6 = inlined_call_operand.vmem [shape: f32[2,32,32], index: 6, kind: input, shape index: {}]   ;;  %s5738_s7 = inlined_call_operand.vmem [shape: f32[2,1,32], index: 7, kind: input, shape index: {}]   ;;  %s5739_s8 = inlined_call_operand.vmem [shape: f32[2,1,32], index: 8, kind: input, shape index: {}]   ;;  %s5740_s9 = inlined_call_operand.vmem [shape: f32[2,1,32], index: 9, kind: input, shape index: {}]   ;;  %s5741_s10 = inlined_call_operand.vmem [shape: f32[2,32,128], index: 10, kind: input, shape index: {}]   ;;  %s5742_s11 = inlined_call_operand.vmem [shape: f32[2,1,128], index: 11, kind: input, shape index: {}]   ;;  %s5743_s12 = inlined_call_operand.vmem [shape: f32[2,128,32], index: 12, kind: input, shape index: {}]   ;;  %s5744_s13 = inlined_call_operand.vmem [shape: f32[2,1,32], index: 13, kind: input, shape index: {}]   ;;  %s5745_s14 = inlined_call_operand.vmem [shape: f32[2,1,32], index: 14, kind: input, shape index: {}]   ;;  %s5746_s15 = inlined_call_operand.vmem [shape: f32[2,1,32], index: 15, kind: input, shape index: {}]   ;;  %s5747_s16 = inlined_call_operand.vmem [shape: f32[32,32], index: 16, kind: input, shape index: {}]   ;;  %s5748_s17 = inlined_call_operand.vmem [shape: f32[1,32], index: 17, kind: input, shape index: {}]   ;;  %s5749_s18 = inlined_call_operand.vmem [shape: f32[32,2], index: 18, kind: input, shape index: {}]   ;;  %s5750_s19 = inlined_call_operand.vmem [shape: f32[1,2], index: 19, kind: input, shape index: {}]   ;;  %s5751_s20 = inlined_call_operand.hbm [shape: f32[2,2], index: 20, kind: output, shape index: {}]  }
   0x1   :  { %5762 = sst [smem:[#allocation5_spill]] %s5731_s0 }
   0x2   :  { %5763 = sst [smem:[#allocation6_spill]] %s5732_s1 }
   0x3   :  { %5764 = sst [smem:[#allocation7_spill]] %s5733_s2 }
   0x4   :  { %5765 = sst [smem:[#allocation8_spill]] %s5734_s3 }
   0x5   :  { %5766 = sst [smem:[#allocation9_spill]] %s5735_s4 }
   0x6   :  { %s5767_s23 = sld [smem:[#allocation5_spill]]  ;;  %vm70_vm0 = vcmask 261120  }
   0xc   :  { %v66_v0 = vld [vmem:[%s5767_s23] sm:$0xff]  ;;  %v67_v1 = vld [vmem:[%s5767_s23 + $0x8] sm:$0xff] }
   0xd   :  { %25 = vsyncpa [#allocation3], 0  ;;  %v71_v2 = vsel %vm70_vm0, %v66_v0, 0.0  ;;  %v74_v3 = vsel %vm70_vm0, %v67_v1, 0.0  ;;  %s5768_s26 = sld [smem:[#allocation9_spill]]  ;;  %s5769_s22 = sld [smem:[#allocation7_spill]]  ;;  %v843_v56 = vlaneseq }
   0xe   :  { %72 = vadd.xlane.f32.xlu0 %v71_v2  ;;  %s5770_s2 = sld [smem:[#allocation8_spill]]  ;;  %v4880_v36 = vmov 0.0   ;;  %v4042_v37 = vld [vmem:[%s5736_s5] ss:$0 sm:$0xff]  ;;  %vm4881_vm1 = vmmov 0   ;;  %s4882_s27 = smov 112  }
   0xf   :  { %4325 = vmatprep.subr.mxu0 %v4880_v36  ;;  %4327 = vmatprep.mubr.msk.f32.mxu0 %vm4881_vm1, %v4880_v36  ;;  %s4883_s28 = smov 120   ;;  %s4884_s4 = smov 104   ;;  %vm228_vm2 = vcmask 64512   ;;  %v844_v59 = vshrl.u32 %v843_v56, 7  ;;  %vm1568_vm3 = vcmask 130048   ;;  %vm1570_vm4 = vcmask 195584  }
  0x10   :  { %s4885_s29 = smov 96   ;;  %s5771_s21 = sld [smem:[#allocation6_spill]]  ;;  %vm3842_vm5 = vcmask 1040384   ;;  %vm4013_vm6 = vcmask 9216  }
  0x11   :  { %v845_v61 = vsub.s32 0, %v844_v59  ;;  %s5760_s1 = smov 64   ;;  %s5754_s23 = smov 24  }
  0x12   :  { %75 = vadd.xlane.f32.xlu0 %v74_v3  ;;  %s5774_s30 = smov 16  }
  0x13   :  { %v120_v14 = vld [vmem:[%s5768_s26] sm:$0xff]  ;;  %v121_v15 = vld [vmem:[%s5768_s26 + $0x8] sm:$0xff]  ;;  %v122_v16 = vld [vmem:[%s5768_s26 + $0x10] sm:$0xff] }
  0x14   :  { %v4622_v17 = vpack.c.bf16 %v121_v15, %v120_v14  ;;  %v123_v18 = vld [vmem:[%s5768_s26 + $0x18] sm:$0xff]  ;;  %v4040_v27 = vld [vmem:[%s5769_s22] ss:$0 sm:$0xff]  ;;  %s5756_s22 = smov 16  }
  0x15   :  { %v4626_v19 = vpack.c.bf16 %v123_v18, %v122_v16  ;;  %v4041_v29 = vld [vmem:[%s5770_s2] ss:$0 sm:$0xff] }
  0x16   :  { %4623 = vmatprep.subr.bf16.mxu1 %v4622_v17  ;;  %v114_v57 = vld [vmem:[%s5771_s21] sm:$0x3]  ;;  %s5758_s21 = smov 8  }
  0x17   :  { %4625 = vmatpush3.bf16.msra.mxu1 %v4622_v17  ;;  %v115_v58 = vsub.f32 1.0, %v114_v57 }
  0x18   :  { %4627 = vmatprep.subr.bf16.mxu1 %v4626_v19 }
  0x19   :  { %v116_v60 = vmul.f32 -1e+09, %v115_v58 }
  0x1b   :  { %4629 = vmatpush3.bf16.msra.mxu1 %v4626_v19  ;;  %v5137_v62 = vrot.slane %v116_v60, %v845_v61 }
  0x1c   :  { %4315 = vmatprep.subr.mxu1 %v4880_v36 }
  0x9b   :  { %v73_v4 = vpop.xlane.xlu0 %72 }
  0x9c   :  { %v78_v5 = vmul.f32 0.03125, %v73_v4 }
  0x9e   :  { %v80_v6 = vsub.f32 %v66_v0, %v78_v5 }
  0x9f   :  { %v76_v7 = vpop.xlane.xlu0 %75 }
  0xa0   :  { %v79_v8 = vmul.f32 0.03125, %v76_v7  ;;  %v82_v9 = vmul.f32 %v80_v6, %v80_v6 }
  0xa2   :  { %v81_v10 = vsub.f32 %v67_v1, %v79_v8  ;;  %v84_v11 = vsel %vm70_vm0, %v82_v9, 0.0 }
  0xa3   :  { %85 = vadd.xlane.f32.xlu1 %v84_v11 }
  0xa4   :  { %v83_v12 = vmul.f32 %v81_v10, %v81_v10 }
  0xa6   :  { %v87_v13 = vsel %vm70_vm0, %v83_v12, 0.0 }
  0xa7   :  { %88 = vadd.xlane.f32.xlu1 %v87_v13 }
 0x130   :  { %v86_v20 = vpop.xlane.xlu1 %85 }
 0x131   :  { %v90_v21 = vmul.f32 0.03125, %v86_v20 }
 0x133   :  { %v92_v22 = vadd.f32 1e-05, %v90_v21 }
 0x134   :  { %v89_v23 = vpop.xlane.xlu1 %88 }
 0x135   :  { %4758 = vrsqrt.f32 %v92_v22  ;;  %v91_v24 = vmul.f32 0.03125, %v89_v23 }
 0x137   :  { %v93_v25 = vadd.f32 1e-05, %v91_v24 }
 0x139   :  { %4760 = vrsqrt.f32 %v93_v25 }
 0x13f   :  { %v4759_v26 = vpop.eup %4758 }
 0x140   :  { %v96_v28 = vmul.f32 %v4759_v26, %v80_v6 }
 0x142   :  { %v104_v30 = vmul.f32 %v4040_v27, %v96_v28 }
 0x143   :  { %v4761_v31 = vpop.eup %4760 }
 0x144   :  { %v97_v32 = vmul.f32 %v4761_v31, %v81_v10  ;;  %v5025_v33 = vadd.f32 %v4041_v29, %v104_v30  ;;  %v118_v10 = vrot.slane %v116_v60, 1 }
 0x146   :  { %v105_v34 = vmul.f32 %v4040_v27, %v97_v32  ;;  %4312 = vmatprep.mubr.msk.f32.mxu1 %vm70_vm0, %v5025_v33  ;;  %v5145_v21 = vrot.slane %v118_v10, %v845_v61 }
 0x148   :  { %v5029_v35 = vadd.f32 %v4041_v29, %v105_v34 }
 0x14a   :  { %4313 = vmatmul.mubr.msk.f32.vlgmr.msra.gmra.mrb[0].mxu1 %vm70_vm0, %v5029_v35 }
 0x14b   :  { %4317 = vmatprep.mubr.msk.f32.mxu1 %vm4881_vm1, %v4880_v36 }
 0x21d   :  { %v4314_v38 = vpop.f32.mrb[0].mxu1 }
 0x21e   :  { %v203_v39 = vpop.f32.mrb[1].mxu1  ;;  %v5048_v41 = vadd.f32 %v4314_v38, %v4042_v37 }
 0x21f   :  { %v5042_v40 = vadd.f32 %v4042_v37, %v203_v39 }
 0x221   :  { %215 = vrot.lane.b32.xlu1 %v5042_v40, %s4882_s27  ;;  %213 = vrot.lane.b32.xlu0 %v5042_v40, %s4883_s28 }
 0x225   :  { %217 = vrot.lane.b32.xlu1 %v5042_v40, %s4884_s4  ;;  %222 = vrot.lane.b32.xlu0 %v5048_v41, %s4882_s27 }
 0x229   :  { %220 = vrot.lane.b32.xlu1 %v5048_v41, %s4883_s28  ;;  %226 = vrot.lane.b32.xlu0 %v5042_v40, %s4885_s29 }
 0x22d   :  { %224 = vrot.lane.b32.xlu1 %v5048_v41, %s4884_s4 }
 0x293   :  { %v5060_v42 = vpop.permute.xlu1 %215  ;;  %v5062_v43 = vpop.permute.xlu0 %213 }
 0x294   :  { %379 = vrot.lane.b32.xlu0 %v5060_v42, %s4885_s29  ;;  %303 = vrot.lane.b32.xlu1 %v5062_v43, %s4885_s29 }
 0x297   :  { %v5068_v44 = vpop.permute.xlu1 %217  ;;  %v5070_v45 = vpop.permute.xlu0 %222 }
 0x298   :  { %531 = vrot.lane.b32.xlu0 %v5048_v41, %s4885_s29  ;;  %455 = vrot.lane.b32.xlu1 %v5068_v44, %s4885_s29 }
 0x29b   :  { %v5076_v46 = vpop.permute.xlu1 %220  ;;  %v227_v47 = vpop.permute.xlu0 %226 }
 0x29c   :  { %607 = vrot.lane.b32.xlu1 %v5076_v46, %s4885_s29  ;;  %683 = vrot.lane.b32.xlu0 %v5070_v45, %s4885_s29 }
 0x29d   :  { %4316 = vmatpush3.xpose.msk.msra.mxu1 %vm228_vm2, %v227_v47 }
 0x29e   :  { %4320 = vmatprep.subr.mxu1 %v4880_v36 }
 0x29f   :  { %v5084_v48 = vpop.permute.xlu1 %224 }
 0x2a0   :  { %4318 = vmatmul.mubr.msk.f32.vlgmr.msra.gmra.mrb[2].mxu1 %vm228_vm2, %v5042_v40  ;;  %759 = vrot.lane.b32.xlu1 %v5084_v48, %s4885_s29 }
 0x2a1   :  { %4322 = vmatprep.mubr.msk.f32.mxu1 %vm4881_vm1, %v4880_v36 }
 0x306   :  { %v304_v49 = vpop.permute.xlu1 %303  ;;  %v380_v50 = vpop.permute.xlu0 %379 }
 0x307   :  { %4321 = vmatpush3.xpose.msk.msra.mxu1 %vm228_vm2, %v304_v49  ;;  %4326 = vmatpush3.xpose.msk.msra.mxu0 %vm228_vm2, %v380_v50 }
 0x308   :  { %4330 = vmatprep.subr.mxu1 %v4880_v36  ;;  %4335 = vmatprep.subr.mxu0 %v4880_v36 }
 0x30a   :  { %v456_v51 = vpop.permute.xlu1 %455  ;;  %4323 = vmatmul.mubr.msk.f32.vlgmr.msra.gmra.mrb[4].mxu1 %vm228_vm2, %v5062_v43  ;;  %4328 = vmatmul.mubr.msk.f32.vlgmr.msra.gmra.mrb[0].mxu0 %vm228_vm2, %v5060_v42  ;;  %v532_v52 = vpop.permute.xlu0 %531 }
 0x30b   :  { %4331 = vmatpush3.xpose.msk.msra.mxu1 %vm228_vm2, %v456_v51  ;;  %4336 = vmatpush3.xpose.msk.msra.mxu0 %vm228_vm2, %v532_v52 }
 0x30c   :  { %4332 = vmatprep.mubr.msk.f32.mxu1 %vm4881_vm1, %v4880_v36  ;;  %4337 = vmatprep.mubr.msk.f32.mxu0 %vm4881_vm1, %v4880_v36 }
 0x30d   :  { %4340 = vmatprep.subr.mxu1 %v4880_v36  ;;  %4345 = vmatprep.subr.mxu0 %v4880_v36 }
 0x30e   :  { %v608_v53 = vpop.permute.xlu1 %607  ;;  %4333 = vmatmul.mubr.msk.f32.vlgmr.msra.gmra.mrb[6].mxu1 %vm228_vm2, %v5068_v44  ;;  %4338 = vmatmul.mubr.msk.f32.vlgmr.msra.gmra.mrb[2].mxu0 %vm228_vm2, %v5048_v41  ;;  %v684_v54 = vpop.permute.xlu0 %683 }
 0x30f   :  { %4341 = vmatpush3.xpose.msk.msra.mxu1 %vm228_vm2, %v608_v53  ;;  %4346 = vmatpush3.xpose.msk.msra.mxu0 %vm228_vm2, %v684_v54 }
 0x310   :  { %4342 = vmatprep.mubr.msk.f32.mxu1 %vm4881_vm1, %v4880_v36  ;;  %4347 = vmatprep.mubr.msk.f32.mxu0 %vm4881_vm1, %v4880_v36 }
 0x311   :  { %4350 = vmatprep.subr.mxu1 %v4880_v36  ;;  %4355 = vmatprep.subr.mxu0 %v4880_v36 }
 0x312   :  { %v760_v55 = vpop.permute.xlu1 %759  ;;  %4343 = vmatmul.mubr.msk.f32.vlgmr.msra.gmra.mrb[8].mxu1 %vm228_vm2, %v5076_v46  ;;  %4348 = vmatmul.mubr.msk.f32.vlgmr.msra.gmra.mrb[4].mxu0 %vm228_vm2, %v5070_v45 }
 0x313   :  { %4351 = vmatpush3.xpose.msk.msra.mxu1 %vm228_vm2, %v760_v55  ;;  %4352 = vmatprep.mubr.msk.f32.mxu1 %vm4881_vm1, %v4880_v36 }
 0x314   :  { %4360 = vmatprep.subr.mxu1 %v4880_v36  ;;  %4357 = vmatprep.mubr.msk.f32.mxu0 %vm4881_vm1, %v4880_v36 }
 0x316   :  { %4353 = vmatmul.mubr.msk.f32.vlgmr.msra.gmra.mrb[10].mxu1 %vm228_vm2, %v5084_v48 }
 0x317   :  { %4362 = vmatprep.mubr.msk.f32.mxu1 %vm4881_vm1, %v4880_v36 }
 0x373   :  { %v299_v63 = vpop.f32.mrb[2].mxu1 }
 0x374   :  { %v835_v0 = vmul.f32 0.35355338, %v299_v63  ;;  %v4319_v1 = vpop.f32.mrb[3].mxu1 }
 0x376   :  { %v851_v2 = vadd.f32 %v5137_v62, %v835_v0 }
 0x378   :  { %v859_v3 = vsel %vm228_vm2, %v851_v2, -inf }
 0x379   :  { %860 = vmax.xlane.f32.xlu0 %v859_v3 }
 0x3dd   :  { %v375_v4 = vpop.f32.mrb[4].mxu1  ;;  %v451_v5 = vpop.f32.mrb[0].mxu0 }
 0x3de   :  { %v836_v6 = vmul.f32 0.35355338, %v375_v4  ;;  %v837_v7 = vmul.f32 0.35355338, %v451_v5  ;;  %v4324_v8 = vpop.f32.mrb[5].mxu1  ;;  %v4329_v9 = vpop.f32.mrb[1].mxu0 }
 0x3e0   :  { %v852_v11 = vadd.f32 %v5137_v62, %v836_v6  ;;  %v853_v12 = vadd.f32 %v5137_v62, %v837_v7 }
 0x3e1   :  { %v527_v13 = vpop.f32.mrb[6].mxu1  ;;  %v603_v14 = vpop.f32.mrb[2].mxu0 }
 0x3e2   :  { %v838_v15 = vmul.f32 0.35355338, %v527_v13  ;;  %v4334_v16 = vpop.f32.mrb[7].mxu1  ;;  %v4339_v17 = vpop.f32.mrb[3].mxu0  ;;  %v839_v18 = vmul.f32 0.35355338, %v603_v14 }
 0x3e3   :  { %v862_v19 = vsel %vm228_vm2, %v852_v11, -inf  ;;  %v865_v20 = vsel %vm228_vm2, %v853_v12, -inf }
 0x3e4   :  { %863 = vmax.xlane.f32.xlu1 %v862_v19  ;;  %866 = vmax.xlane.f32.xlu0 %v865_v20  ;;  %v854_v22 = vadd.f32 %v5137_v62, %v838_v15  ;;  %v855_v30 = vadd.f32 %v5145_v21, %v839_v18 }
 0x3e5   :  { %v679_v23 = vpop.f32.mrb[8].mxu1  ;;  %v755_v24 = vpop.f32.mrb[4].mxu0 }
 0x3e6   :  { %v840_v25 = vmul.f32 0.35355338, %v679_v23  ;;  %v4344_v26 = vpop.f32.mrb[9].mxu1  ;;  %v4349_v27 = vpop.f32.mrb[5].mxu0  ;;  %v841_v28 = vmul.f32 0.35355338, %v755_v24 }
 0x3e7   :  { %v868_v29 = vsel %vm228_vm2, %v854_v22, -inf  ;;  %v871_v39 = vsel %vm228_vm2, %v855_v30, -inf }
 0x3e8   :  { %869 = vmax.xlane.f32.xlu0 %v868_v29  ;;  %v856_v31 = vadd.f32 %v5145_v21, %v840_v25  ;;  %v857_v47 = vadd.f32 %v5145_v21, %v841_v28 }
 0x3e9   :  { %v831_v32 = vpop.f32.mrb[10].mxu1 }
 0x3ea   :  { %v842_v34 = vmul.f32 0.35355338, %v831_v32  ;;  %v4354_v37 = vpop.f32.mrb[11].mxu1  ;;  %v874_v38 = vsel %vm228_vm2, %v856_v31, -inf  ;;  %v877_v51 = vsel %vm228_vm2, %v857_v47, -inf }
 0x3eb   :  { %875 = vmax.xlane.f32.xlu1 %v874_v38 }
 0x3ec   :  { %872 = vmax.xlane.f32.xlu0 %v871_v39  ;;  %v858_v49 = vadd.f32 %v5145_v21, %v842_v34 }
 0x3ee   :  { %v880_v50 = vsel %vm228_vm2, %v858_v49, -inf }
 0x3ef   :  { %881 = vmax.xlane.f32.xlu1 %v880_v50 }
 0x3f0   :  { %878 = vmax.xlane.f32.xlu0 %v877_v51 }
 0x400   :  { %1023 = vrot.lane.b32.xlu1 %v5062_v43, %s5760_s1 }
 0x404   :  { %1099 = vrot.lane.b32.xlu1 %v5060_v42, %s5760_s1 }
 0x406   :  { %947 = vrot.lane.b32.xlu0 %v5042_v40, %s5760_s1  ;;  %v861_v52 = vpop.xlane.xlu0 %860 }
 0x407   :  { %v883_v53 = vsub.f32 %v851_v2, %v861_v52 }
 0x408   :  { %1175 = vrot.lane.b32.xlu1 %v5068_v44, %s5760_s1 }
 0x409   :  { %v891_v54 = vmul.f32 1.442695, %v883_v53 }
 0x40a   :  { %1251 = vrot.lane.b32.xlu0 %v5048_v41, %s5760_s1 }
 0x40b   :  { %4762 = vpow2.f32 %v891_v54 }
 0x40c   :  { %1327 = vrot.lane.b32.xlu1 %v5076_v46, %s5760_s1 }
 0x415   :  { %v5169_v43 = vpop.eup %4762 }
 0x416   :  { %v907_v42 = vsel %vm228_vm2, %v5169_v43, 0.0 }
 0x429   :  { %908 = vadd.xlane.f32.xlu0 %v907_v42 }
 0x471   :  { %v864_v40 = vpop.xlane.xlu1 %863  ;;  %v867_v55 = vpop.xlane.xlu0 %866 }
 0x472   :  { %v884_v56 = vsub.f32 %v852_v11, %v864_v40  ;;  %v885_v44 = vsub.f32 %v853_v12, %v867_v55 }
 0x474   :  { %v893_v57 = vmul.f32 1.442695, %v884_v56  ;;  %v895_v58 = vmul.f32 1.442695, %v885_v44 }
 0x475   :  { %v870_v41 = vpop.xlane.xlu0 %869 }
 0x476   :  { %4764 = vpow2.f32 %v893_v57  ;;  %v886_v59 = vsub.f32 %v854_v22, %v870_v41 }
 0x477   :  { %4766 = vpow2.f32 %v895_v58 }
 0x478   :  { %v897_v46 = vmul.f32 1.442695, %v886_v59  ;;  %v876_v60 = vpop.xlane.xlu1 %875 }
 0x479   :  { %v888_v61 = vsub.f32 %v856_v31, %v876_v60  ;;  %v873_v63 = vpop.xlane.xlu0 %872 }
 0x47a   :  { %4768 = vpow2.f32 %v897_v46  ;;  %v887_v0 = vsub.f32 %v855_v30, %v873_v63  ;;  %v1588_v63 = vld [vmem:[%s5737_s6 + $0x8] sm:$0xff] }
 0x47b   :  { %v901_v1 = vmul.f32 1.442695, %v888_v61  ;;  %v1587_v61 = vld [vmem:[%s5737_s6] sm:$0xff] }
 0x47c   :  { %v899_v2 = vmul.f32 1.442695, %v887_v0  ;;  %v882_v3 = vpop.xlane.xlu1 %881  ;;  %v4630_v0 = vpack.c.bf16 %v1588_v63, %v1587_v61 }
 0x47d   :  { %4770 = vpow2.f32 %v901_v1  ;;  %v890_v4 = vsub.f32 %v858_v49, %v882_v3  ;;  %v879_v5 = vpop.xlane.xlu0 %878  ;;  %v1589_v1 = vld [vmem:[%s5737_s6 + $0x10] sm:$0xff] }
 0x47e   :  { %4772 = vpow2.f32 %v899_v2  ;;  %v889_v6 = vsub.f32 %v857_v47, %v879_v5  ;;  %v1590_v2 = vld [vmem:[%s5737_s6 + $0x18] sm:$0xff] }
 0x47f   :  { %v905_v7 = vmul.f32 1.442695, %v890_v4  ;;  %v4634_v3 = vpack.c.bf16 %v1590_v2, %v1589_v1 }
 0x480   :  { %v4765_v8 = vpop.eup %4764  ;;  %v903_v9 = vmul.f32 1.442695, %v889_v6  ;;  %v1024_v10 = vpop.permute.xlu1 %1023 }
 0x481   :  { %v4767_v11 = vpop.eup %4766  ;;  %4774 = vpow2.f32 %v905_v7  ;;  %v948_v12 = vpop.permute.xlu0 %947  ;;  %v910_v13 = vsel %vm228_vm2, %v4765_v8, 0.0  ;;  %4361 = vmatpush3.msra.mxu1 %v1024_v10 }
 0x482   :  { %4776 = vpow2.f32 %v903_v9  ;;  %911 = vadd.xlane.f32.xlu1 %v910_v13  ;;  %v913_v14 = vsel %vm228_vm2, %v4767_v11, 0.0  ;;  %4356 = vmatpush3.msra.mxu0 %v948_v12 }
 0x483   :  { %914 = vadd.xlane.f32.xlu0 %v913_v14  ;;  %4365 = vmatprep.subr.mxu0 %v4880_v36 }
 0x484   :  { %v4769_v15 = vpop.eup %4768  ;;  %4370 = vmatprep.subr.mxu1 %v4880_v36  ;;  %v1100_v30 = vpop.permute.xlu1 %1099 }
 0x485   :  { %v916_v16 = vsel %vm228_vm2, %v4769_v15, 0.0  ;;  %v1252_v26 = vpop.permute.xlu0 %1251 }
 0x486   :  { %917 = vadd.xlane.f32.xlu1 %v916_v16 }
 0x487   :  { %v4771_v17 = vpop.eup %4770 }
 0x488   :  { %v4773_v18 = vpop.eup %4772  ;;  %v922_v19 = vsel %vm228_vm2, %v4771_v17, 0.0  ;;  %v1176_v31 = vpop.permute.xlu1 %1175 }
 0x489   :  { %v919_v20 = vsel %vm228_vm2, %v4773_v18, 0.0 }
 0x48a   :  { %923 = vadd.xlane.f32.xlu1 %v922_v19  ;;  %920 = vadd.xlane.f32.xlu0 %v919_v20 }
 0x48b   :  { %v5180_v22 = vpop.eup %4774 }
 0x48c   :  { %v5182_v23 = vpop.eup %4776  ;;  %v928_v24 = vsel %vm228_vm2, %v5180_v22, 0.0 }
 0x48d   :  { %v925_v25 = vsel %vm228_vm2, %v5182_v23, 0.0 }
 0x48e   :  { %929 = vadd.xlane.f32.xlu1 %v928_v24  ;;  %926 = vadd.xlane.f32.xlu0 %v925_v25 }
 0x49f   :  { %1479 = vrot.lane.b32.xlu1 %v5084_v48, %s5760_s1  ;;  %v1328_v48 = vpop.permute.xlu1 %1327 }
 0x4a4   :  { %1403 = vrot.lane.b32.xlu0 %v5070_v45, %s5760_s1  ;;  %s5775_s1 = smov 24  }
 0x4b6   :  { %v909_v27 = vpop.xlane.xlu0 %908 }
 0x4b7   :  { %4778 = vrcp.f32 %v909_v27 }
 0x4c1   :  { %v4779_v28 = vpop.eup %4778 }
 0x4c2   :  { %v939_v29 = vmul.f32 %v4779_v28, %v5169_v43 }
 0x4c4   :  { %4358 = vmatmul.mubr.msk.f32.vlgmr.msra.gmra.mrb[6].mxu0 %vm228_vm2, %v939_v29 }
 0x4c5   :  { %4366 = vmatpush3.msra.mxu0 %v1100_v30  ;;  %4367 = vmatprep.mubr.msk.f32.mxu0 %vm4881_vm1, %v4880_v36 }
 0x4c6   :  { %4375 = vmatprep.subr.mxu0 %v4880_v36 }
 0x50f   :  { %v912_v32 = vpop.xlane.xlu1 %911 }
 0x510   :  { %4780 = vrcp.f32 %v912_v32  ;;  %v915_v45 = vpop.xlane.xlu0 %914 }
 0x511   :  { %4782 = vrcp.f32 %v915_v45 }
 0x513   :  { %v918_v34 = vpop.xlane.xlu1 %917 }
 0x514   :  { %4784 = vrcp.f32 %v918_v34 }
 0x517   :  { %v924_v37 = vpop.xlane.xlu1 %923  ;;  %v921_v38 = vpop.xlane.xlu0 %920 }
 0x518   :  { %4786 = vrcp.f32 %v924_v37 }
 0x519   :  { %4788 = vrcp.f32 %v921_v38 }
 0x51a   :  { %v4781_v39 = vpop.eup %4780 }
 0x51b   :  { %v4783_v47 = vpop.eup %4782  ;;  %v940_v49 = vmul.f32 %v4781_v39, %v4765_v8  ;;  %v930_v50 = vpop.xlane.xlu1 %929 }
 0x51c   :  { %v927_v51 = vpop.xlane.xlu0 %926  ;;  %v941_v52 = vmul.f32 %v4783_v47, %v4767_v11  ;;  %4790 = vrcp.f32 %v930_v50 }
 0x51d   :  { %4792 = vrcp.f32 %v927_v51  ;;  %4363 = vmatmul.mubr.msk.f32.vlgmr.msra.gmra.mrb[12].mxu1 %vm228_vm2, %v940_v49 }
 0x51e   :  { %v4785_v53 = vpop.eup %4784  ;;  %4368 = vmatmul.mubr.msk.f32.vlgmr.msra.gmra.mrb[8].mxu0 %vm228_vm2, %v941_v52  ;;  %4371 = vmatpush3.msra.mxu1 %v1176_v31  ;;  %v4069_v31 = vld [vmem:[%s5738_s7] ss:$0 sm:$0xff] }
 0x51f   :  { %v942_v54 = vmul.f32 %v4785_v53, %v4769_v15  ;;  %4376 = vmatpush3.msra.mxu0 %v1252_v26  ;;  %4372 = vmatprep.mubr.msk.f32.mxu1 %vm4881_vm1, %v4880_v36  ;;  %v1480_v56 = vpop.permute.xlu1 %1479 }
 0x520   :  { %4380 = vmatprep.subr.mxu1 %v4880_v36  ;;  %4377 = vmatprep.mubr.msk.f32.mxu0 %vm4881_vm1, %v4880_v36  ;;  %v1404_v57 = vpop.permute.xlu0 %1403 }
 0x521   :  { %4373 = vmatmul.mubr.msk.f32.vlgmr.msra.gmra.mrb[14].mxu1 %vm228_vm2, %v942_v54  ;;  %4385 = vmatprep.subr.mxu0 %v4880_v36 }
 0x522   :  { %v4787_v43 = vpop.eup %4786  ;;  %4381 = vmatpush3.msra.mxu1 %v1328_v48  ;;  %4382 = vmatprep.mubr.msk.f32.mxu1 %vm4881_vm1, %v4880_v36 }
 0x523   :  { %v4789_v42 = vpop.eup %4788  ;;  %v944_v40 = vmul.f32 %v4787_v43, %v4771_v17  ;;  %4390 = vmatprep.subr.mxu1 %v4880_v36 }
 0x524   :  { %v943_v55 = vmul.f32 %v4789_v42, %v4773_v18 }
 0x525   :  { %4383 = vmatmul.mubr.msk.f32.vlgmr.msra.gmra.mrb[16].mxu1 %vm228_vm2, %v944_v40 }
 0x526   :  { %v4791_v44 = vpop.eup %4790  ;;  %4378 = vmatmul.mubr.msk.f32.vlgmr.msra.gmra.mrb[10].mxu0 %vm228_vm2, %v943_v55  ;;  %4391 = vmatpush3.msra.mxu1 %v1480_v56  ;;  %v1726_v55 = vld [vmem:[%s5741_s10 + $0x8] sm:$0xff] }
 0x527   :  { %v4793_v58 = vpop.eup %4792  ;;  %v946_v41 = vmul.f32 %v4791_v44, %v5180_v22  ;;  %4386 = vmatpush3.msra.mxu0 %v1404_v57  ;;  %4387 = vmatprep.mubr.msk.f32.mxu0 %vm4881_vm1, %v4880_v36  ;;  %v1727_v44 = vld [vmem:[%s5741_s10 + $0x10] sm:$0xff]  ;;  %v1728_v57 = vld [vmem:[%s5741_s10 + $0x18] sm:$0xff] }
 0x528   :  { %v945_v59 = vmul.f32 %v4793_v58, %v5182_v23  ;;  %4392 = vmatprep.mubr.msk.f32.mxu1 %vm4881_vm1, %v4880_v36  ;;  %4631 = vmatprep.subr.bf16.mxu0 %v4630_v0  ;;  %v4642_v58 = vpack.c.bf16 %v1728_v57, %v1727_v44 }
 0x529   :  { %4393 = vmatmul.mubr.msk.f32.vlgmr.msra.gmra.mrb[18].mxu1 %vm228_vm2, %v946_v41  ;;  %v1835_v41 = vld [vmem:[%s5743_s12] sm:$0xff] }
 0x52a   :  { %4388 = vmatmul.mubr.msk.f32.vlgmr.msra.gmra.mrb[12].mxu0 %vm228_vm2, %v945_v59  ;;  %v1836_v59 = vld [vmem:[%s5743_s12 + $0x8] sm:$0xff] }
 0x52b   :  { %4633 = vmatpush3.bf16.msra.mxu0 %v4630_v0 }
 0x52c   :  { %4635 = vmatprep.subr.bf16.mxu0 %v4634_v3 }
 0x52f   :  { %4637 = vmatpush3.bf16.msra.mxu0 %v4634_v3 }
 0x597   :  { %v1019_v46 = vpop.f32.mrb[6].mxu0 }
 0x598   :  { %v4359_v60 = vpop.f32.mrb[7].mxu0 }
 0x5f0   :  { %v1095_v4 = vpop.f32.mrb[12].mxu1 }
 0x5f1   :  { %v1171_v5 = vpop.f32.mrb[8].mxu0  ;;  %v4364_v6 = vpop.f32.mrb[13].mxu1  ;;  %1556 = vrot.lane.b32.xlu0 %v1095_v4, %s5758_s21  ;;  %v4072_v4 = vld [vmem:[%s5739_s8] ss:$0 sm:$0xff] }
 0x5f2   :  { %1560 = vrot.lane.b32.xlu1 %v1171_v5, %s5756_s22  ;;  %v4369_v7 = vpop.f32.mrb[9].mxu0  ;;  %v4073_v6 = vld [vmem:[%s5740_s9] ss:$0 sm:$0xff] }
 0x5f4   :  { %v1247_v8 = vpop.f32.mrb[14].mxu1 }
 0x5f5   :  { %v4374_v9 = vpop.f32.mrb[15].mxu1 }
 0x5f6   :  { %1564 = vrot.lane.b32.xlu1 %v1247_v8, %s5754_s23 }
 0x5f8   :  { %v1399_v10 = vpop.f32.mrb[16].mxu1 }
 0x5f9   :  { %v1323_v11 = vpop.f32.mrb[10].mxu0  ;;  %v4384_v12 = vpop.f32.mrb[17].mxu1  ;;  %1573 = vrot.lane.b32.xlu0 %v1399_v10, %s5758_s21 }
 0x5fa   :  { %v4379_v13 = vpop.f32.mrb[11].mxu0 }
 0x5fb   :  { %v1837_v13 = vld [vmem:[%s5743_s12 + $0x10] sm:$0xff] }
 0x5fc   :  { %v1551_v14 = vpop.f32.mrb[18].mxu1 }
 0x5fd   :  { %v1475_v15 = vpop.f32.mrb[12].mxu0  ;;  %v4394_v16 = vpop.f32.mrb[19].mxu1  ;;  %1581 = vrot.lane.b32.xlu1 %v1551_v14, %s5754_s23  ;;  %v1838_v14 = vld [vmem:[%s5743_s12 + $0x18] sm:$0xff] }
 0x5fe   :  { %1577 = vrot.lane.b32.xlu0 %v1475_v15, %s5756_s22  ;;  %v4389_v17 = vpop.f32.mrb[13].mxu0  ;;  %v4650_v15 = vpack.c.bf16 %v1838_v14, %v1837_v13  ;;  %v1839_v16 = vld [vmem:[%s5743_s12 + $0x20] sm:$0xff] }
 0x5ff   :  { %v1840_v17 = vld [vmem:[%s5743_s12 + $0x28] sm:$0xff] }
 0x663   :  { %v1557_v18 = vpop.permute.xlu0 %1556 }
 0x664   :  { %v1561_v19 = vpop.permute.xlu1 %1560  ;;  %v1567_v20 = vsel %vm228_vm2, %v1019_v46, %v1557_v18  ;;  %v4646_v46 = vpack.c.bf16 %v1836_v59, %v1835_v41  ;;  %v4654_v18 = vpack.c.bf16 %v1840_v17, %v1839_v16  ;;  %v4081_v16 = vld [vmem:[%s5768_s26 + $0x28] sm:$0xff] }
 0x665   :  { %v1569_v23 = vsel %vm1568_vm3, %v1567_v20, %v1561_v19  ;;  %v1841_v19 = vld [vmem:[%s5743_s12 + $0x30] sm:$0xff]  ;;  %v1842_v20 = vld [vmem:[%s5743_s12 + $0x38] sm:$0xff] }
 0x666   :  { %4647 = vmatprep.subr.bf16.mxu0 %v4646_v46 }
 0x668   :  { %v1565_v22 = vpop.permute.xlu1 %1564 }
 0x669   :  { %v1571_v24 = vsel %vm1570_vm4, %v1569_v23, %v1565_v22  ;;  %v4658_v22 = vpack.c.bf16 %v1842_v20, %v1841_v19  ;;  %v1843_v23 = vld [vmem:[%s5743_s12 + $0x40] sm:$0xff]  ;;  %v4083_v19 = vld [vmem:[%s5768_s26 + $0x38] sm:$0xff] }
 0x66a   :  { %4403 = vmatprep.mubr.msk.f32.mxu0 %vm70_vm0, %v1571_v24  ;;  %v1844_v24 = vld [vmem:[%s5743_s12 + $0x48] sm:$0xff] }
 0x66b   :  { %v1574_v25 = vpop.permute.xlu0 %1573 }
 0x66c   :  { %v1584_v27 = vsel %vm228_vm2, %v1323_v11, %v1574_v25  ;;  %v4662_v25 = vpack.c.bf16 %v1844_v24, %v1843_v23 }
 0x66f   :  { %v1582_v26 = vpop.permute.xlu1 %1581 }
 0x670   :  { %v1578_v28 = vpop.permute.xlu0 %1577 }
 0x671   :  { %v1585_v29 = vsel %vm1568_vm3, %v1584_v27, %v1578_v28  ;;  %v1846_v27 = vld [vmem:[%s5743_s12 + $0x58] sm:$0xff] }
 0x672   :  { %v1586_v30 = vsel %vm1570_vm4, %v1585_v29, %v1582_v26  ;;  %v1845_v26 = vld [vmem:[%s5743_s12 + $0x50] sm:$0xff]  ;;  %v1847_v29 = vld [vmem:[%s5743_s12 + $0x60] sm:$0xff] }
 0x673   :  { %4404 = vmatmul.mubr.msk.f32.vlgmr.msra.gmra.mrb[14].mxu0 %vm70_vm0, %v1586_v30  ;;  %v4666_v28 = vpack.c.bf16 %v1846_v27, %v1845_v26  ;;  %v1848_v30 = vld [vmem:[%s5743_s12 + $0x68] sm:$0xff] }
 0x674   :  { %4649 = vmatpush3.bf16.msra.mxu0 %v4646_v46  ;;  %v4077_v46 = vld [vmem:[%s5744_s13] ss:$0 sm:$0xff] }
 0x675   :  { %4651 = vmatprep.subr.bf16.mxu0 %v4650_v15 }
 0x678   :  { %4653 = vmatpush3.bf16.msra.mxu0 %v4650_v15 }
 0x679   :  { %4655 = vmatprep.subr.bf16.mxu0 %v4654_v18 }
 0x67c   :  { %4657 = vmatpush3.bf16.msra.mxu0 %v4654_v18  ;;  %v4082_v18 = vld [vmem:[%s5768_s26 + $0x30] sm:$0xff] }
 0x67d   :  { %4659 = vmatprep.subr.bf16.mxu0 %v4658_v22  ;;  %v4682_v20 = vpack.c.bf16 %v4083_v19, %v4082_v18 }
 0x680   :  { %4661 = vmatpush3.bf16.msra.mxu0 %v4658_v22 }
 0x681   :  { %4663 = vmatprep.subr.bf16.mxu0 %v4662_v25 }
 0x684   :  { %4665 = vmatpush3.bf16.msra.mxu0 %v4662_v25 }
 0x685   :  { %4667 = vmatprep.subr.bf16.mxu0 %v4666_v28 }
 0x688   :  { %4669 = vmatpush3.bf16.msra.mxu0 %v4666_v28 }
 0x746   :  { %v4405_v48 = vpop.f32.mrb[14].mxu0 }
 0x747   :  { %v1676_v32 = vadd.f32 %v4405_v48, %v4069_v31  ;;  %v1670_v45 = vpop.f32.mrb[15].mxu0  ;;  %v1849_v48 = vld [vmem:[%s5743_s12 + $0x70] sm:$0xff] }
 0x748   :  { %v1671_v34 = vadd.f32 %v4069_v31, %v1670_v45  ;;  %v4670_v31 = vpack.c.bf16 %v1848_v30, %v1847_v29  ;;  %v4078_v29 = vld [vmem:[%s5745_s14] ss:$0 sm:$0xff] }
 0x749   :  { %v1680_v37 = vadd.f32 %v1676_v32, %v5029_v35  ;;  %v1850_v32 = vld [vmem:[%s5743_s12 + $0x78] sm:$0xff] }
 0x74a   :  { %v1679_v38 = vadd.f32 %v1671_v34, %v5025_v33  ;;  %v1725_v33 = vld [vmem:[%s5741_s10] sm:$0xff]  ;;  %4671 = vmatprep.subr.bf16.mxu0 %v4670_v31  ;;  %v4674_v45 = vpack.c.bf16 %v1850_v32, %v1849_v48 }
 0x74b   :  { %v1686_v39 = vsel %vm70_vm0, %v1680_v37, 0.0  ;;  %v4638_v56 = vpack.c.bf16 %v1726_v55, %v1725_v33  ;;  %4673 = vmatpush3.bf16.msra.mxu0 %v4670_v31  ;;  %v4074_v34 = vld [vmem:[%s5742_s11] ss:$0 sm:$0xff] }
 0x74c   :  { %1687 = vadd.xlane.f32.xlu1 %v1686_v39  ;;  %v1683_v47 = vsel %vm70_vm0, %v1679_v38, 0.0  ;;  %4675 = vmatprep.subr.bf16.mxu0 %v4674_v45  ;;  %v4079_v32 = vld [vmem:[%s5746_s15] ss:$0 sm:$0xff] }
 0x74d   :  { %1684 = vadd.xlane.f32.xlu0 %v1683_v47  ;;  %4639 = vmatprep.subr.bf16.mxu1 %v4638_v56 }
 0x74e   :  { %4641 = vmatpush3.bf16.msra.mxu1 %v4638_v56 }
 0x74f   :  { %4643 = vmatprep.subr.bf16.mxu1 %v4642_v58  ;;  %4677 = vmatpush3.bf16.msra.mxu0 %v4674_v45 }
 0x750   :  { %4493 = vmatprep.subr.mxu0 %v4880_v36 }
 0x752   :  { %4645 = vmatpush3.bf16.msra.mxu1 %v4642_v58 }
 0x7d9   :  { %v1688_v49 = vpop.xlane.xlu1 %1687 }
 0x7da   :  { %v1690_v50 = vmul.f32 0.03125, %v1688_v49  ;;  %v1685_v51 = vpop.xlane.xlu0 %1684 }
 0x7db   :  { %v1689_v52 = vmul.f32 0.03125, %v1685_v51 }
 0x7dc   :  { %v1692_v53 = vsub.f32 %v1680_v37, %v1690_v50 }
 0x7dd   :  { %v1691_v54 = vsub.f32 %v1679_v38, %v1689_v52 }
 0x7de   :  { %v1694_v40 = vmul.f32 %v1692_v53, %v1692_v53 }
 0x7df   :  { %v1693_v43 = vmul.f32 %v1691_v54, %v1691_v54 }
 0x7e0   :  { %v1698_v35 = vsel %vm70_vm0, %v1694_v40, 0.0 }
 0x7e1   :  { %v1695_v42 = vsel %vm70_vm0, %v1693_v43, 0.0 }
 0x7e2   :  { %1696 = vadd.xlane.f32.xlu0 %v1695_v42 }
 0x7e6   :  { %1699 = vadd.xlane.f32.xlu0 %v1698_v35 }
 0x86f   :  { %v1697_v60 = vpop.xlane.xlu0 %1696 }
 0x870   :  { %v1701_v61 = vmul.f32 0.03125, %v1697_v60 }
 0x872   :  { %v1703_v63 = vadd.f32 1e-05, %v1701_v61 }
 0x873   :  { %v1700_v0 = vpop.xlane.xlu0 %1699 }
 0x874   :  { %4794 = vrsqrt.f32 %v1703_v63  ;;  %v1702_v1 = vmul.f32 0.03125, %v1700_v0 }
 0x876   :  { %v1704_v2 = vadd.f32 1e-05, %v1702_v1 }
 0x878   :  { %4796 = vrsqrt.f32 %v1704_v2 }
 0x87e   :  { %v4795_v3 = vpop.eup %4794 }
 0x87f   :  { %v1707_v5 = vmul.f32 %v4795_v3, %v1691_v54 }
 0x881   :  { %v1715_v7 = vmul.f32 %v4072_v4, %v1707_v5 }
 0x882   :  { %v4797_v8 = vpop.eup %4796 }
 0x883   :  { %v1708_v9 = vmul.f32 %v4797_v8, %v1692_v53  ;;  %v5278_v10 = vadd.f32 %v4073_v6, %v1715_v7 }
 0x885   :  { %v1716_v11 = vmul.f32 %v4072_v4, %v1708_v9  ;;  %4414 = vmatprep.mubr.msk.f32.mxu1 %vm70_vm0, %v5278_v10 }
 0x887   :  { %v5282_v12 = vadd.f32 %v4073_v6, %v1716_v11 }
 0x889   :  { %4415 = vmatmul.mubr.msk.f32.vlgmr.msra.gmra.mrb[20].mxu1 %vm70_vm0, %v5282_v12 }
 0x95c   :  { %v4416_v37 = vpop.f32.mrb[20].mxu1 }
 0x95d   :  { %v1814_v38 = vadd.f32 %v4416_v37, %v4074_v34  ;;  %v1808_v39 = vpop.f32.mrb[21].mxu1 }
 0x95e   :  { %v1809_v47 = vadd.f32 %v4074_v34, %v1808_v39  ;;  %v4085_v39 = vld [vmem:[%s5736_s5 + $0x1] ss:$0 sm:$0xff]  ;;  %s5772_s5 = smov 64  }
 0x95f   :  { %v1820_v49 = vmul.f32 0.044715, %v1814_v38  ;;  %v1818_v58 = vmul.f32 0.5, %v1814_v38 }
 0x960   :  { %v1819_v50 = vmul.f32 0.044715, %v1809_v47  ;;  %v1817_v44 = vmul.f32 0.5, %v1809_v47 }
 0x961   :  { %v1822_v51 = vmul.f32 %v1820_v49, %v1814_v38 }
 0x962   :  { %v1821_v52 = vmul.f32 %v1819_v50, %v1809_v47 }
 0x963   :  { %v1824_v53 = vmul.f32 %v1822_v51, %v1814_v38 }
 0x964   :  { %v1823_v54 = vmul.f32 %v1821_v52, %v1809_v47 }
 0x965   :  { %v1826_v43 = vadd.f32 %v1824_v53, %v1814_v38 }
 0x966   :  { %v1825_v42 = vadd.f32 %v1823_v54, %v1809_v47 }
 0x967   :  { %v1828_v40 = vmul.f32 0.7978846, %v1826_v43 }
 0x968   :  { %v1827_v35 = vmul.f32 0.7978846, %v1825_v42 }
 0x969   :  { %4798 = vtanh.f32 %v1828_v40 }
 0x96a   :  { %4800 = vtanh.f32 %v1827_v35 }
 0x973   :  { %v4799_v33 = vpop.eup %4798 }
 0x974   :  { %v4801_v55 = vpop.eup %4800  ;;  %v1832_v56 = vadd.f32 1.0, %v4799_v33 }
 0x975   :  { %v1831_v57 = vadd.f32 1.0, %v4801_v55 }
 0x976   :  { %v1834_v59 = vmul.f32 %v1832_v56, %v1818_v58 }
 0x977   :  { %v1833_v41 = vmul.f32 %v1831_v57, %v1817_v44 }
 0x979   :  { %4449 = vmatprep.mubr.f32.mxu0 %v1833_v41 }
 0x97a   :  { %4450 = vmatmul.mubr.f32.vlgmr.msra.gmra.mrb[16].mxu0 %v1834_v59 }
 0x97b   :  { %4495 = vmatprep.mubr.msk.f32.mxu0 %vm4881_vm1, %v4880_v36 }
 0xa4d   :  { %v4451_v60 = vpop.f32.mrb[16].mxu0 }
 0xa4e   :  { %v1930_v61 = vadd.f32 %v4451_v60, %v4077_v46  ;;  %v1924_v63 = vpop.f32.mrb[17].mxu0 }
 0xa4f   :  { %v1925_v0 = vadd.f32 %v4077_v46, %v1924_v63 }
 0xa50   :  { %v1934_v1 = vadd.f32 %v1930_v61, %v5282_v12 }
 0xa51   :  { %v1933_v2 = vadd.f32 %v1925_v0, %v5278_v10  ;;  %v4080_v10 = vld [vmem:[%s5768_s26 + $0x20] sm:$0xff] }
 0xa52   :  { %v1940_v3 = vsel %vm70_vm0, %v1934_v1, 0.0  ;;  %v4678_v17 = vpack.c.bf16 %v4081_v16, %v4080_v10 }
 0xa53   :  { %1941 = vadd.xlane.f32.xlu1 %v1940_v3  ;;  %v1937_v4 = vsel %vm70_vm0, %v1933_v2, 0.0 }
 0xa54   :  { %1938 = vadd.xlane.f32.xlu0 %v1937_v4  ;;  %4679 = vmatprep.subr.bf16.mxu1 %v4678_v17 }
 0xa55   :  { %4681 = vmatpush3.bf16.msra.mxu1 %v4678_v17 }
 0xa56   :  { %4683 = vmatprep.subr.bf16.mxu1 %v4682_v20 }
 0xa59   :  { %4685 = vmatpush3.bf16.msra.mxu1 %v4682_v20 }
 0xa5a   :  { %4463 = vmatprep.subr.mxu1 %v4880_v36 }
 0xae0   :  { %v1942_v5 = vpop.xlane.xlu1 %1941 }
 0xae1   :  { %v1944_v6 = vmul.f32 0.03125, %v1942_v5  ;;  %v1939_v7 = vpop.xlane.xlu0 %1938 }
 0xae2   :  { %v1943_v8 = vmul.f32 0.03125, %v1939_v7 }
 0xae3   :  { %v1946_v9 = vsub.f32 %v1934_v1, %v1944_v6 }
 0xae4   :  { %v1945_v11 = vsub.f32 %v1933_v2, %v1943_v8 }
 0xae5   :  { %v1948_v13 = vmul.f32 %v1946_v9, %v1946_v9 }
 0xae6   :  { %v1947_v14 = vmul.f32 %v1945_v11, %v1945_v11 }
 0xae7   :  { %v1952_v15 = vsel %vm70_vm0, %v1948_v13, 0.0 }
 0xae8   :  { %1953 = vadd.xlane.f32.xlu1 %v1952_v15  ;;  %v1949_v12 = vsel %vm70_vm0, %v1947_v14, 0.0 }
 0xae9   :  { %1950 = vadd.xlane.f32.xlu0 %v1949_v12 }
 0xb75   :  { %v1954_v22 = vpop.xlane.xlu1 %1953 }
 0xb76   :  { %v1956_v23 = vmul.f32 0.03125, %v1954_v22  ;;  %v1951_v24 = vpop.xlane.xlu0 %1950 }
 0xb77   :  { %v1955_v25 = vmul.f32 0.03125, %v1951_v24 }
 0xb78   :  { %v1958_v26 = vadd.f32 1e-05, %v1956_v23 }
 0xb79   :  { %v1957_v27 = vadd.f32 1e-05, %v1955_v25 }
 0xb7a   :  { %4802 = vrsqrt.f32 %v1958_v26 }
 0xb7b   :  { %4804 = vrsqrt.f32 %v1957_v27 }
 0xb84   :  { %v4803_v28 = vpop.eup %4802 }
 0xb85   :  { %v4805_v30 = vpop.eup %4804  ;;  %v1962_v31 = vmul.f32 %v4803_v28, %v1946_v9 }
 0xb86   :  { %v1961_v48 = vmul.f32 %v4805_v30, %v1945_v11 }
 0xb87   :  { %v1970_v45 = vmul.f32 %v4078_v29, %v1962_v31 }
 0xb88   :  { %v1969_v34 = vmul.f32 %v4078_v29, %v1961_v48 }
 0xb89   :  { %v5364_v38 = vadd.f32 %v4079_v32, %v1970_v45 }
 0xb8a   :  { %v5362_v37 = vadd.f32 %v4079_v32, %v1969_v34 }
 0xb8c   :  { %4460 = vmatprep.mubr.msk.f32.mxu1 %vm70_vm0, %v5362_v37 }
 0xb8d   :  { %4461 = vmatmul.mubr.msk.f32.vlgmr.msra.gmra.mrb[22].mxu1 %vm70_vm0, %v5364_v38 }
 0xb8e   :  { %4465 = vmatprep.mubr.msk.f32.mxu1 %vm4881_vm1, %v4880_v36 }
 0xc60   :  { %v4462_v47 = vpop.f32.mrb[22].mxu1 }
 0xc61   :  { %v2064_v49 = vpop.f32.mrb[23].mxu1  ;;  %v5381_v51 = vadd.f32 %v4462_v47, %v4085_v39 }
 0xc62   :  { %v5375_v50 = vadd.f32 %v4085_v39, %v2064_v49 }
 0xc64   :  { %2076 = vrot.lane.b32.xlu1 %v5375_v50, %s4882_s27  ;;  %2074 = vrot.lane.b32.xlu0 %v5375_v50, %s4883_s28 }
 0xc68   :  { %2078 = vrot.lane.b32.xlu1 %v5375_v50, %s4884_s4  ;;  %2083 = vrot.lane.b32.xlu0 %v5381_v51, %s4882_s27  ;;  %s5773_s27 = smov 8  }
 0xc6c   :  { %2081 = vrot.lane.b32.xlu1 %v5381_v51, %s4883_s28  ;;  %2087 = vrot.lane.b32.xlu0 %v5375_v50, %s4885_s29 }
 0xc70   :  { %2085 = vrot.lane.b32.xlu1 %v5381_v51, %s4884_s4 }
 0xcd6   :  { %v5393_v52 = vpop.permute.xlu1 %2076  ;;  %v5395_v53 = vpop.permute.xlu0 %2074 }
 0xcd7   :  { %2239 = vrot.lane.b32.xlu0 %v5393_v52, %s4885_s29  ;;  %2163 = vrot.lane.b32.xlu1 %v5395_v53, %s4885_s29 }
 0xcda   :  { %v5401_v54 = vpop.permute.xlu1 %2078  ;;  %v5403_v43 = vpop.permute.xlu0 %2083 }
 0xcdb   :  { %2391 = vrot.lane.b32.xlu0 %v5381_v51, %s4885_s29  ;;  %2315 = vrot.lane.b32.xlu1 %v5401_v54, %s4885_s29 }
 0xcde   :  { %v5409_v42 = vpop.permute.xlu1 %2081  ;;  %v2088_v40 = vpop.permute.xlu0 %2087 }
 0xcdf   :  { %2467 = vrot.lane.b32.xlu1 %v5409_v42, %s4885_s29  ;;  %2543 = vrot.lane.b32.xlu0 %v5403_v43, %s4885_s29 }
 0xce0   :  { %4464 = vmatpush3.xpose.msk.msra.mxu1 %vm228_vm2, %v2088_v40 }
 0xce1   :  { %4468 = vmatprep.subr.mxu1 %v4880_v36 }
 0xce2   :  { %v5417_v35 = vpop.permute.xlu1 %2085 }
 0xce3   :  { %4466 = vmatmul.mubr.msk.f32.vlgmr.msra.gmra.mrb[24].mxu1 %vm228_vm2, %v5375_v50  ;;  %2619 = vrot.lane.b32.xlu1 %v5417_v35, %s4885_s29 }
 0xce4   :  { %4470 = vmatprep.mubr.msk.f32.mxu1 %vm4881_vm1, %v4880_v36 }
 0xd49   :  { %v2164_v33 = vpop.permute.xlu1 %2163  ;;  %v2240_v55 = vpop.permute.xlu0 %2239 }
 0xd4a   :  { %4469 = vmatpush3.xpose.msk.msra.mxu1 %vm228_vm2, %v2164_v33 }
 0xd4b   :  { %4473 = vmatprep.subr.mxu1 %v4880_v36 }
 0xd4d   :  { %4471 = vmatmul.mubr.msk.f32.vlgmr.msra.gmra.mrb[26].mxu1 %vm228_vm2, %v5395_v53  ;;  %v2392_v56 = vpop.permute.xlu0 %2391  ;;  %v2316_v44 = vpop.permute.xlu1 %2315 }
 0xd4e   :  { %4474 = vmatpush3.xpose.msk.msra.mxu1 %vm228_vm2, %v2240_v55  ;;  %4475 = vmatprep.mubr.msk.f32.mxu1 %vm4881_vm1, %v4880_v36 }
 0xd4f   :  { %4478 = vmatprep.subr.mxu1 %v4880_v36 }
 0xd51   :  { %4476 = vmatmul.mubr.msk.f32.vlgmr.msra.gmra.mrb[28].mxu1 %vm228_vm2, %v5393_v52  ;;  %v2544_v57 = vpop.permute.xlu0 %2543  ;;  %v2468_v58 = vpop.permute.xlu1 %2467 }
 0xd52   :  { %4479 = vmatpush3.xpose.msk.msra.mxu1 %vm228_vm2, %v2316_v44  ;;  %4494 = vmatpush3.xpose.msk.msra.mxu0 %vm228_vm2, %v2544_v57 }
 0xd53   :  { %4480 = vmatprep.mubr.msk.f32.mxu1 %vm4881_vm1, %v4880_v36  ;;  %4483 = vmatprep.subr.mxu1 %v4880_v36 }
 0xd54   :  { %4503 = vmatprep.subr.mxu0 %v4880_v36 }
 0xd55   :  { %4481 = vmatmul.mubr.msk.f32.vlgmr.msra.gmra.mrb[30].mxu1 %vm228_vm2, %v5401_v54  ;;  %4496 = vmatmul.mubr.msk.f32.vlgmr.msra.gmra.mrb[18].mxu0 %vm228_vm2, %v5403_v43  ;;  %v2620_v41 = vpop.permute.xlu1 %2619 }
 0xd56   :  { %4484 = vmatpush3.xpose.msk.msra.mxu1 %vm228_vm2, %v2392_v56  ;;  %4485 = vmatprep.mubr.msk.f32.mxu1 %vm4881_vm1, %v4880_v36 }
 0xd57   :  { %4488 = vmatprep.subr.mxu1 %v4880_v36  ;;  %4505 = vmatprep.mubr.msk.f32.mxu0 %vm4881_vm1, %v4880_v36 }
 0xd59   :  { %4486 = vmatmul.mubr.msk.f32.vlgmr.msra.gmra.mrb[32].mxu1 %vm228_vm2, %v5381_v51 }
 0xd5a   :  { %4489 = vmatpush3.xpose.msk.msra.mxu1 %vm228_vm2, %v2468_v58  ;;  %4490 = vmatprep.mubr.msk.f32.mxu1 %vm4881_vm1, %v4880_v36 }
 0xd5b   :  { %4498 = vmatprep.subr.mxu1 %v4880_v36 }
 0xd5d   :  { %4491 = vmatmul.mubr.msk.f32.vlgmr.msra.gmra.mrb[34].mxu1 %vm228_vm2, %v5409_v42 }
 0xd5e   :  { %4499 = vmatpush3.xpose.msk.msra.mxu1 %vm228_vm2, %v2620_v41  ;;  %4500 = vmatprep.mubr.msk.f32.mxu1 %vm4881_vm1, %v4880_v36 }
 0xd5f   :  { %4508 = vmatprep.subr.mxu1 %v4880_v36 }
 0xd61   :  { %4501 = vmatmul.mubr.msk.f32.vlgmr.msra.gmra.mrb[36].mxu1 %vm228_vm2, %v5417_v35 }
 0xd62   :  { %4510 = vmatprep.mubr.msk.f32.mxu1 %vm4881_vm1, %v4880_v36 }
 0xdb6   :  { %v2159_v59 = vpop.f32.mrb[24].mxu1 }
 0xdb7   :  { %v2695_v46 = vmul.f32 0.35355338, %v2159_v59  ;;  %v4467_v60 = vpop.f32.mrb[25].mxu1 }
 0xdb9   :  { %v2703_v61 = vadd.f32 %v2695_v46, %v5137_v62 }
 0xdbb   :  { %v2711_v63 = vsel %vm228_vm2, %v2703_v61, -inf }
 0xdbc   :  { %2712 = vmax.xlane.f32.xlu0 %v2711_v63 }
 0xe20   :  { %v2235_v0 = vpop.f32.mrb[26].mxu1 }
 0xe21   :  { %v2696_v1 = vmul.f32 0.35355338, %v2235_v0  ;;  %v4472_v2 = vpop.f32.mrb[27].mxu1 }
 0xe23   :  { %v2704_v3 = vadd.f32 %v2696_v1, %v5137_v62 }
 0xe24   :  { %v2311_v4 = vpop.f32.mrb[28].mxu1 }
 0xe25   :  { %v2697_v5 = vmul.f32 0.35355338, %v2311_v4  ;;  %v4477_v6 = vpop.f32.mrb[29].mxu1  ;;  %v2714_v7 = vsel %vm228_vm2, %v2704_v3, -inf }
 0xe26   :  { %2715 = vmax.xlane.f32.xlu1 %v2714_v7 }
 0xe27   :  { %v5472_v8 = vadd.f32 %v2697_v5, %v5137_v62 }
 0xe28   :  { %v2387_v9 = vpop.f32.mrb[30].mxu1  ;;  %v2615_v11 = vpop.f32.mrb[18].mxu0 }
 0xe29   :  { %v2698_v13 = vmul.f32 0.35355338, %v2387_v9  ;;  %v4482_v14 = vpop.f32.mrb[31].mxu1  ;;  %v4497_v15 = vpop.f32.mrb[19].mxu0  ;;  %v2717_v12 = vsel %vm228_vm2, %v5472_v8, -inf }
 0xe2a   :  { %2718 = vmax.xlane.f32.xlu0 %v2717_v12  ;;  %v2701_v20 = vmul.f32 0.35355338, %v2615_v11 }
 0xe2b   :  { %v2706_v10 = vadd.f32 %v2698_v13, %v5137_v62 }
 0xe2c   :  { %v2463_v16 = vpop.f32.mrb[32].mxu1  ;;  %v2709_v27 = vadd.f32 %v2701_v20, %v5145_v21 }
 0xe2d   :  { %v2699_v17 = vmul.f32 0.35355338, %v2463_v16  ;;  %v4487_v18 = vpop.f32.mrb[33].mxu1  ;;  %v2720_v19 = vsel %vm228_vm2, %v2706_v10, -inf }
 0xe2e   :  { %2721 = vmax.xlane.f32.xlu0 %v2720_v19  ;;  %v2729_v48 = vsel %vm228_vm2, %v2709_v27, -inf }
 0xe2f   :  { %v5479_v22 = vadd.f32 %v2699_v17, %v5145_v21 }
 0xe30   :  { %v2539_v23 = vpop.f32.mrb[34].mxu1 }
 0xe31   :  { %v2700_v24 = vmul.f32 0.35355338, %v2539_v23  ;;  %v4492_v25 = vpop.f32.mrb[35].mxu1  ;;  %v2723_v26 = vsel %vm228_vm2, %v5479_v22, -inf }
 0xe32   :  { %2724 = vmax.xlane.f32.xlu0 %v2723_v26 }
 0xe33   :  { %v2708_v62 = vadd.f32 %v2700_v24, %v5145_v21 }
 0xe34   :  { %v2691_v28 = vpop.f32.mrb[36].mxu1 }
 0xe35   :  { %v2702_v29 = vmul.f32 0.35355338, %v2691_v28  ;;  %v4502_v30 = vpop.f32.mrb[37].mxu1  ;;  %v2726_v31 = vsel %vm228_vm2, %v2708_v62, -inf }
 0xe36   :  { %2727 = vmax.xlane.f32.xlu1 %v2726_v31  ;;  %2730 = vmax.xlane.f32.xlu0 %v2729_v48 }
 0xe37   :  { %v2710_v32 = vadd.f32 %v2702_v29, %v5145_v21 }
 0xe39   :  { %v2732_v45 = vsel %vm228_vm2, %v2710_v32, -inf }
 0xe3a   :  { %2733 = vmax.xlane.f32.xlu1 %v2732_v45 }
 0xe49   :  { %v2713_v34 = vpop.xlane.xlu0 %2712 }
 0xe4a   :  { %v2735_v21 = vsub.f32 %v2703_v61, %v2713_v34 }
 0xe4b   :  { %2875 = vrot.lane.b32.xlu1 %v5395_v53, %s5772_s5 }
 0xe4c   :  { %2799 = vrot.lane.b32.xlu0 %v5375_v50, %s5772_s5  ;;  %v2743_v39 = vmul.f32 1.442695, %v2735_v21 }
 0xe4e   :  { %4806 = vpow2.f32 %v2743_v39 }
 0xe4f   :  { %2951 = vrot.lane.b32.xlu1 %v5393_v52, %s5772_s5 }
 0xe50   :  { %3103 = vrot.lane.b32.xlu0 %v5381_v51, %s5772_s5 }
 0xe53   :  { %3027 = vrot.lane.b32.xlu1 %v5401_v54, %s5772_s5 }
 0xe57   :  { %3179 = vrot.lane.b32.xlu1 %v5409_v42, %s5772_s5 }
 0xe58   :  { %v5501_v47 = vpop.eup %4806 }
 0xe59   :  { %v2759_v49 = vsel %vm228_vm2, %v5501_v47, 0.0 }
 0xe6f   :  { %2760 = vadd.xlane.f32.xlu0 %v2759_v49 }
 0xeb3   :  { %v2716_v50 = vpop.xlane.xlu1 %2715 }
 0xeb4   :  { %v2736_v52 = vsub.f32 %v2704_v3, %v2716_v50 }
 0xeb6   :  { %v2745_v53 = vmul.f32 1.442695, %v2736_v52 }
 0xeb7   :  { %v2719_v51 = vpop.xlane.xlu0 %2718 }
 0xeb8   :  { %4808 = vpow2.f32 %v2745_v53  ;;  %v2737_v56 = vsub.f32 %v5472_v8, %v2719_v51 }
 0xeba   :  { %v2747_v60 = vmul.f32 1.442695, %v2737_v56 }
 0xebb   :  { %v2722_v40 = vpop.xlane.xlu0 %2721 }
 0xebc   :  { %v2738_v54 = vsub.f32 %v2706_v10, %v2722_v40 }
 0xebe   :  { %v2749_v33 = vmul.f32 1.442695, %v2738_v54 }
 0xebf   :  { %v2725_v55 = vpop.xlane.xlu0 %2724 }
 0xec0   :  { %4810 = vpow2.f32 %v2749_v33  ;;  %v2739_v61 = vsub.f32 %v5479_v22, %v2725_v55 }
 0xec2   :  { %v5505_v42 = vpop.eup %4808  ;;  %v2751_v5 = vmul.f32 1.442695, %v2739_v61 }
 0xec3   :  { %v2728_v44 = vpop.xlane.xlu1 %2727  ;;  %v2762_v57 = vsel %vm228_vm2, %v5505_v42, 0.0  ;;  %v2731_v41 = vpop.xlane.xlu0 %2730 }
 0xec4   :  { %v2740_v58 = vsub.f32 %v2708_v62, %v2728_v44  ;;  %2763 = vadd.xlane.f32.xlu1 %v2762_v57  ;;  %v2741_v59 = vsub.f32 %v2709_v27, %v2731_v41  ;;  %v4112_v57 = vld [vmem:[%s5737_s6 + $0x20] sm:$0xff] }
 0xec6   :  { %v2753_v46 = vmul.f32 1.442695, %v2740_v58  ;;  %v2755_v63 = vmul.f32 1.442695, %v2741_v59  ;;  %v4113_v58 = vld [vmem:[%s5737_s6 + $0x28] sm:$0xff] }
 0xec7   :  { %v2734_v0 = vpop.xlane.xlu1 %2733  ;;  %v2800_v2 = vpop.permute.xlu0 %2799  ;;  %v4686_v59 = vpack.c.bf16 %v4113_v58, %v4112_v57  ;;  %v4122_v58 = vld [vmem:[%s5739_s8 + $0x1] ss:$0 sm:$0xff] }
 0xec8   :  { %4812 = vpow2.f32 %v2753_v46  ;;  %v2742_v1 = vsub.f32 %v2710_v32, %v2734_v0  ;;  %4504 = vmatpush3.msra.mxu0 %v2800_v2  ;;  %v4114_v46 = vld [vmem:[%s5737_s6 + $0x30] sm:$0xff] }
 0xec9   :  { %4814 = vpow2.f32 %v2755_v63  ;;  %4513 = vmatprep.subr.mxu0 %v4880_v36 }
 0xeca   :  { %v2757_v3 = vmul.f32 1.442695, %v2742_v1  ;;  %v4811_v4 = vpop.eup %4810  ;;  %4816 = vpow2.f32 %v2747_v60  ;;  %v4115_v60 = vld [vmem:[%s5737_s6 + $0x38] sm:$0xff] }
 0xecb   :  { %v2876_v6 = vpop.permute.xlu1 %2875  ;;  %v2768_v7 = vsel %vm228_vm2, %v4811_v4, 0.0  ;;  %v3104_v18 = vpop.permute.xlu0 %3103  ;;  %v4690_v61 = vpack.c.bf16 %v4115_v60, %v4114_v46 }
 0xecc   :  { %4818 = vpow2.f32 %v2757_v3  ;;  %4509 = vmatpush3.msra.mxu1 %v2876_v6  ;;  %2769 = vadd.xlane.f32.xlu1 %v2768_v7 }
 0xecd   :  { %4518 = vmatprep.subr.mxu1 %v4880_v36  ;;  %4820 = vpow2.f32 %v2751_v5 }
 0xecf   :  { %v2952_v23 = vpop.permute.xlu1 %2951 }
 0xed2   :  { %v4813_v8 = vpop.eup %4812 }
 0xed3   :  { %v5514_v9 = vpop.eup %4814  ;;  %v2774_v11 = vsel %vm228_vm2, %v4813_v8, 0.0  ;;  %v3028_v24 = vpop.permute.xlu1 %3027 }
 0xed4   :  { %2775 = vadd.xlane.f32.xlu1 %v2774_v11  ;;  %v2777_v13 = vsel %vm228_vm2, %v5514_v9, 0.0  ;;  %v4817_v14 = vpop.eup %4816 }
 0xed5   :  { %2778 = vadd.xlane.f32.xlu0 %v2777_v13  ;;  %v2765_v10 = vsel %vm228_vm2, %v4817_v14, 0.0 }
 0xed6   :  { %v4819_v15 = vpop.eup %4818 }
 0xed7   :  { %v2780_v12 = vsel %vm228_vm2, %v4819_v15, 0.0  ;;  %v4821_v16 = vpop.eup %4820 }
 0xed8   :  { %2781 = vadd.xlane.f32.xlu1 %v2780_v12  ;;  %v2771_v17 = vsel %vm228_vm2, %v4821_v16, 0.0 }
 0xed9   :  { %2766 = vadd.xlane.f32.xlu0 %v2765_v10 }
 0xedd   :  { %2772 = vadd.xlane.f32.xlu0 %v2771_v17 }
 0xee9   :  { %3331 = vrot.lane.b32.xlu1 %v5417_v35, %s5772_s5  ;;  %v3180_v35 = vpop.permute.xlu1 %3179 }
 0xef3   :  { %3255 = vrot.lane.b32.xlu0 %v5403_v43, %s5772_s5 }
 0xefc   :  { %v2761_v19 = vpop.xlane.xlu0 %2760 }
 0xefd   :  { %4822 = vrcp.f32 %v2761_v19 }
 0xf07   :  { %v4823_v20 = vpop.eup %4822 }
 0xf08   :  { %v2791_v22 = vmul.f32 %v4823_v20, %v5501_v47 }
 0xf0a   :  { %4506 = vmatmul.mubr.msk.f32.vlgmr.msra.gmra.mrb[20].mxu0 %vm228_vm2, %v2791_v22  ;;  %v4117_v22 = vld [vmem:[%s5738_s7 + $0x1] ss:$0 sm:$0xff] }
 0xf0b   :  { %4514 = vmatpush3.msra.mxu0 %v2952_v23  ;;  %4515 = vmatprep.mubr.msk.f32.mxu0 %vm4881_vm1, %v4880_v36 }
 0xf0c   :  { %4523 = vmatprep.subr.mxu0 %v4880_v36 }
 0xf51   :  { %v2764_v25 = vpop.xlane.xlu1 %2763 }
 0xf52   :  { %4824 = vrcp.f32 %v2764_v25 }
 0xf59   :  { %v2770_v43 = vpop.xlane.xlu1 %2769 }
 0xf5a   :  { %4826 = vrcp.f32 %v2770_v43 }
 0xf5c   :  { %v4825_v26 = vpop.eup %4824 }
 0xf5d   :  { %v2792_v27 = vmul.f32 %v4825_v26, %v5505_v42 }
 0xf5f   :  { %4511 = vmatmul.mubr.msk.f32.vlgmr.msra.gmra.mrb[38].mxu1 %vm228_vm2, %v2792_v27 }
 0xf60   :  { %4519 = vmatpush3.msra.mxu1 %v3028_v24  ;;  %4520 = vmatprep.mubr.msk.f32.mxu1 %vm4881_vm1, %v4880_v36 }
 0xf61   :  { %v2776_v62 = vpop.xlane.xlu1 %2775  ;;  %4528 = vmatprep.subr.mxu1 %v4880_v36 }
 0xf62   :  { %4828 = vrcp.f32 %v2776_v62  ;;  %v2779_v28 = vpop.xlane.xlu0 %2778 }
 0xf64   :  { %v4827_v29 = vpop.eup %4826 }
 0xf65   :  { %v2782_v30 = vpop.xlane.xlu1 %2781  ;;  %v2794_v31 = vmul.f32 %v4827_v29, %v4811_v4 }
 0xf66   :  { %4830 = vrcp.f32 %v2782_v30  ;;  %v2767_v48 = vpop.xlane.xlu0 %2766 }
 0xf67   :  { %4832 = vrcp.f32 %v2767_v48  ;;  %4521 = vmatmul.mubr.msk.f32.vlgmr.msra.gmra.mrb[40].mxu1 %vm228_vm2, %v2794_v31 }
 0xf68   :  { %4529 = vmatpush3.msra.mxu1 %v3180_v35  ;;  %4530 = vmatprep.mubr.msk.f32.mxu1 %vm4881_vm1, %v4880_v36 }
 0xf69   :  { %4538 = vmatprep.subr.mxu1 %v4880_v36  ;;  %v3332_v21 = vpop.permute.xlu1 %3331 }
 0xf6a   :  { %v2773_v32 = vpop.xlane.xlu0 %2772 }
 0xf6b   :  { %4834 = vrcp.f32 %v2773_v32 }
 0xf6c   :  { %v4829_v45 = vpop.eup %4828  ;;  %4836 = vrcp.f32 %v2779_v28 }
 0xf6d   :  { %v2796_v34 = vmul.f32 %v4829_v45, %v4813_v8 }
 0xf6e   :  { %v3256_v40 = vpop.permute.xlu0 %3255 }
 0xf6f   :  { %4531 = vmatmul.mubr.msk.f32.vlgmr.msra.gmra.mrb[42].mxu1 %vm228_vm2, %v2796_v34 }
 0xf70   :  { %v4831_v39 = vpop.eup %4830  ;;  %4539 = vmatpush3.msra.mxu1 %v3332_v21  ;;  %4540 = vmatprep.mubr.msk.f32.mxu1 %vm4881_vm1, %v4880_v36 }
 0xf71   :  { %v4833_v47 = vpop.eup %4832  ;;  %v2798_v49 = vmul.f32 %v4831_v39, %v4819_v15  ;;  %v4125_v39 = vld [vmem:[%s5741_s10 + $0x28] sm:$0xff] }
 0xf72   :  { %v2793_v50 = vmul.f32 %v4833_v47, %v4817_v14 }
 0xf73   :  { %4541 = vmatmul.mubr.msk.f32.vlgmr.msra.gmra.mrb[44].mxu1 %vm228_vm2, %v2798_v49  ;;  %v4126_v49 = vld [vmem:[%s5741_s10 + $0x30] sm:$0xff] }
 0xf74   :  { %4516 = vmatmul.mubr.msk.f32.vlgmr.msra.gmra.mrb[22].mxu0 %vm228_vm2, %v2793_v50  ;;  %v4127_v50 = vld [vmem:[%s5741_s10 + $0x38] sm:$0xff] }
 0xf75   :  { %v4835_v52 = vpop.eup %4834  ;;  %4524 = vmatpush3.msra.mxu0 %v3104_v18  ;;  %4525 = vmatprep.mubr.msk.f32.mxu0 %vm4881_vm1, %v4880_v36 }
 0xf76   :  { %v2795_v53 = vmul.f32 %v4835_v52, %v4821_v16  ;;  %4533 = vmatprep.subr.mxu0 %v4880_v36  ;;  %v4837_v51 = vpop.eup %4836  ;;  %v4698_v52 = vpack.c.bf16 %v4127_v50, %v4126_v49 }
 0xf77   :  { %v2797_v54 = vmul.f32 %v4837_v51, %v5514_v9  ;;  %v4133_v51 = vld [vmem:[%s5743_s12 + $0x88] sm:$0xff] }
 0xf78   :  { %4526 = vmatmul.mubr.msk.f32.vlgmr.msra.gmra.mrb[24].mxu0 %vm228_vm2, %v2795_v53  ;;  %v4132_v53 = vld [vmem:[%s5743_s12 + $0x80] sm:$0xff] }
 0xf79   :  { %4534 = vmatpush3.msra.mxu0 %v3256_v40  ;;  %4535 = vmatprep.mubr.msk.f32.mxu0 %vm4881_vm1, %v4880_v36  ;;  %v4702_v40 = vpack.c.bf16 %v4133_v51, %v4132_v53  ;;  %v4149_v53 = vld [vmem:[%s5744_s13 + $0x1] ss:$0 sm:$0xff] }
 0xf7a   :  { %4687 = vmatprep.subr.bf16.mxu0 %v4686_v59 }
 0xf7c   :  { %4536 = vmatmul.mubr.msk.f32.vlgmr.msra.gmra.mrb[26].mxu0 %vm228_vm2, %v2797_v54 }
 0xf7d   :  { %4689 = vmatpush3.bf16.msra.mxu0 %v4686_v59  ;;  %v4123_v59 = vld [vmem:[%s5740_s9 + $0x1] ss:$0 sm:$0xff] }
 0xf7e   :  { %4691 = vmatprep.subr.bf16.mxu0 %v4690_v61 }
 0xf81   :  { %4693 = vmatpush3.bf16.msra.mxu0 %v4690_v61 }
 0xf82   :  { %4703 = vmatprep.subr.bf16.mxu0 %v4702_v40 }
 0xfdd   :  { %v2871_v33 = vpop.f32.mrb[20].mxu0 }
 0xfde   :  { %v4507_v55 = vpop.f32.mrb[21].mxu0 }
0x1032   :  { %v2947_v42 = vpop.f32.mrb[38].mxu1 }
0x1033   :  { %v4512_v56 = vpop.f32.mrb[39].mxu1  ;;  %3408 = vrot.lane.b32.xlu0 %v2947_v42, %s5773_s27 }
0x103a   :  { %v3099_v44 = vpop.f32.mrb[40].mxu1 }
0x103b   :  { %v4522_v41 = vpop.f32.mrb[41].mxu1 }
0x1042   :  { %v3251_v63 = vpop.f32.mrb[42].mxu1 }
0x1043   :  { %v4532_v0 = vpop.f32.mrb[43].mxu1  ;;  %3423 = vrot.lane.b32.xlu0 %v3251_v63, %s5773_s27 }
0x1046   :  { %v3403_v1 = vpop.f32.mrb[44].mxu1 }
0x1047   :  { %v3023_v2 = vpop.f32.mrb[22].mxu0  ;;  %v4542_v3 = vpop.f32.mrb[45].mxu1 }
0x1048   :  { %3412 = vrot.lane.b32.xlu1 %v3023_v2, %s5774_s30  ;;  %v4517_v4 = vpop.f32.mrb[23].mxu0  ;;  %v4134_v2 = vld [vmem:[%s5743_s12 + $0x90] sm:$0xff]  ;;  %v4135_v3 = vld [vmem:[%s5743_s12 + $0x98] sm:$0xff] }
0x1049   :  { %v4706_v4 = vpack.c.bf16 %v4135_v3, %v4134_v2  ;;  %v3845_v3 = vld [vmem:[%s5747_s16 + $0x8] sm:$0xff] }
0x104b   :  { %v3175_v5 = vpop.f32.mrb[24].mxu0 }
0x104c   :  { %3416 = vrot.lane.b32.xlu1 %v3099_v44, %s5775_s1  ;;  %v4527_v6 = vpop.f32.mrb[25].mxu0 }
0x104d   :  { %v4137_v6 = vld [vmem:[%s5743_s12 + $0xa8] sm:$0xff] }
0x104f   :  { %v3327_v7 = vpop.f32.mrb[26].mxu0 }
0x1050   :  { %3431 = vrot.lane.b32.xlu1 %v3403_v1, %s5775_s1  ;;  %3427 = vrot.lane.b32.xlu0 %v3327_v7, %s5774_s30  ;;  %v4537_v8 = vpop.f32.mrb[27].mxu0 }
0x1051   :  { %v4138_v8 = vld [vmem:[%s5743_s12 + $0xb0] sm:$0xff] }
0x10a5   :  { %v3409_v9 = vpop.permute.xlu0 %3408 }
0x10a6   :  { %v3419_v13 = vsel %vm228_vm2, %v2871_v33, %v3409_v9  ;;  %v4139_v9 = vld [vmem:[%s5743_s12 + $0xb8] sm:$0xff] }
0x10b5   :  { %v3424_v14 = vpop.permute.xlu0 %3423 }
0x10b6   :  { %v3434_v16 = vsel %vm228_vm2, %v3175_v5, %v3424_v14  ;;  %v4136_v5 = vld [vmem:[%s5743_s12 + $0xa0] sm:$0xff]  ;;  %v4141_v14 = vld [vmem:[%s5743_s12 + $0xc8] sm:$0xff] }
0x10b7   :  { %v4710_v7 = vpack.c.bf16 %v4137_v6, %v4136_v5  ;;  %v3846_v5 = vld [vmem:[%s5747_s16 + $0x10] sm:$0xff]  ;;  %v3847_v6 = vld [vmem:[%s5747_s16 + $0x18] sm:$0xff] }
0x10ba   :  { %v3413_v11 = vpop.permute.xlu1 %3412 }
0x10bb   :  { %v3420_v15 = vsel %vm1568_vm3, %v3419_v13, %v3413_v11  ;;  %v4714_v11 = vpack.c.bf16 %v4139_v9, %v4138_v8  ;;  %v4140_v13 = vld [vmem:[%s5743_s12 + $0xc0] sm:$0xff]  ;;  %v4738_v8 = vpack.c.bf16 %v3847_v6, %v3846_v5 }
0x10be   :  { %v3417_v12 = vpop.permute.xlu1 %3416 }
0x10bf   :  { %v3421_v10 = vsel %vm1570_vm4, %v3420_v15, %v3417_v12  ;;  %v4718_v15 = vpack.c.bf16 %v4141_v14, %v4140_v13  ;;  %v4142_v12 = vld [vmem:[%s5743_s12 + $0xd0] sm:$0xff] }
0x10c0   :  { %4551 = vmatprep.mubr.msk.f32.mxu0 %vm70_vm0, %v3421_v10  ;;  %v4143_v10 = vld [vmem:[%s5743_s12 + $0xd8] sm:$0xff] }
0x10c2   :  { %v3432_v17 = vpop.permute.xlu1 %3431  ;;  %v3428_v18 = vpop.permute.xlu0 %3427 }
0x10c3   :  { %v3435_v19 = vsel %vm1568_vm3, %v3434_v16, %v3428_v18  ;;  %v4722_v16 = vpack.c.bf16 %v4143_v10, %v4142_v12  ;;  %v4145_v18 = vld [vmem:[%s5743_s12 + $0xe8] sm:$0xff] }
0x10c4   :  { %v3436_v20 = vsel %vm1570_vm4, %v3435_v19, %v3432_v17  ;;  %v4144_v17 = vld [vmem:[%s5743_s12 + $0xe0] sm:$0xff] }
0x10c5   :  { %4552 = vmatmul.mubr.msk.f32.vlgmr.msra.gmra.mrb[28].mxu0 %vm70_vm0, %v3436_v20  ;;  %v4726_v19 = vpack.c.bf16 %v4145_v18, %v4144_v17  ;;  %v4146_v20 = vld [vmem:[%s5743_s12 + $0xf0] sm:$0xff] }
0x10c6   :  { %4705 = vmatpush3.bf16.msra.mxu0 %v4702_v40 }
0x10c7   :  { %4707 = vmatprep.subr.bf16.mxu0 %v4706_v4 }
0x10ca   :  { %4709 = vmatpush3.bf16.msra.mxu0 %v4706_v4 }
0x10cb   :  { %4711 = vmatprep.subr.bf16.mxu0 %v4710_v7 }
0x10ce   :  { %4713 = vmatpush3.bf16.msra.mxu0 %v4710_v7  ;;  %v4890_v7 = vmov 0.0|0.0  }
0x10cf   :  { %4715 = vmatprep.subr.bf16.mxu0 %v4714_v11 }
0x10d2   :  { %4717 = vmatpush3.bf16.msra.mxu0 %v4714_v11 }
0x10d3   :  { %4719 = vmatprep.subr.bf16.mxu0 %v4718_v15 }
0x10d6   :  { %4721 = vmatpush3.bf16.msra.mxu0 %v4718_v15 }
0x10d7   :  { %4723 = vmatprep.subr.bf16.mxu0 %v4722_v16 }
0x10da   :  { %4725 = vmatpush3.bf16.msra.mxu0 %v4722_v16  ;;  %v4152_v16 = vld [vmem:[%s5745_s14 + $0x1] ss:$0 sm:$0xff] }
0x10db   :  { %4727 = vmatprep.subr.bf16.mxu0 %v4726_v19 }
0x10de   :  { %4729 = vmatpush3.bf16.msra.mxu0 %v4726_v19 }
0x1198   :  { %v4553_v23 = vpop.f32.mrb[28].mxu0 }
0x1199   :  { %v3528_v24 = vadd.f32 %v4553_v23, %v4117_v22  ;;  %v3522_v35 = vpop.f32.mrb[29].mxu0 }
0x119a   :  { %v3523_v25 = vadd.f32 %v4117_v22, %v3522_v35  ;;  %v4147_v22 = vld [vmem:[%s5743_s12 + $0xf8] sm:$0xff] }
0x119b   :  { %v3532_v43 = vadd.f32 %v3528_v24, %v5364_v38  ;;  %v4730_v23 = vpack.c.bf16 %v4147_v22, %v4146_v20  ;;  %v4129_v24 = vld [vmem:[%s5742_s11 + $0x1] ss:$0 sm:$0xff] }
0x119c   :  { %v3531_v26 = vadd.f32 %v3523_v25, %v5362_v37  ;;  %v4124_v37 = vld [vmem:[%s5741_s10 + $0x20] sm:$0xff] }
0x119d   :  { %v3540_v27 = vsel %vm70_vm0, %v3532_v43, 0.0  ;;  %v4694_v47 = vpack.c.bf16 %v4125_v39, %v4124_v37  ;;  %4731 = vmatprep.subr.bf16.mxu0 %v4730_v23  ;;  %v4153_v20 = vld [vmem:[%s5746_s15 + $0x1] ss:$0 sm:$0xff] }
0x119e   :  { %3541 = vadd.xlane.f32.xlu1 %v3540_v27  ;;  %v3537_v62 = vsel %vm70_vm0, %v3531_v26, 0.0  ;;  %4733 = vmatpush3.bf16.msra.mxu0 %v4730_v23 }
0x119f   :  { %3538 = vadd.xlane.f32.xlu0 %v3537_v62  ;;  %4695 = vmatprep.subr.bf16.mxu1 %v4694_v47 }
0x11a0   :  { %4697 = vmatpush3.bf16.msra.mxu1 %v4694_v47 }
0x11a1   :  { %4699 = vmatprep.subr.bf16.mxu1 %v4698_v52 }
0x11a4   :  { %4701 = vmatpush3.bf16.msra.mxu1 %v4698_v52 }
0x11a5   :  { %4734 = vmatprep.subr.bf16.mxu1 %v4890_v7 }
0x122b   :  { %v3542_v28 = vpop.xlane.xlu1 %3541 }
0x122c   :  { %v3544_v29 = vmul.f32 0.03125, %v3542_v28  ;;  %v3539_v30 = vpop.xlane.xlu0 %3538 }
0x122d   :  { %v3543_v31 = vmul.f32 0.03125, %v3539_v30 }
0x122e   :  { %v3546_v48 = vsub.f32 %v3532_v43, %v3544_v29 }
0x122f   :  { %v3545_v32 = vsub.f32 %v3531_v26, %v3543_v31 }
0x1230   :  { %v3548_v21 = vmul.f32 %v3546_v48, %v3546_v48 }
0x1231   :  { %v3547_v45 = vmul.f32 %v3545_v32, %v3545_v32 }
0x1232   :  { %v3552_v38 = vsel %vm70_vm0, %v3548_v21, 0.0 }
0x1233   :  { %v3549_v34 = vsel %vm70_vm0, %v3547_v45, 0.0 }
0x1234   :  { %3550 = vadd.xlane.f32.xlu0 %v3549_v34 }
0x1238   :  { %3553 = vadd.xlane.f32.xlu0 %v3552_v38 }
0x12c1   :  { %v3551_v54 = vpop.xlane.xlu0 %3550 }
0x12c2   :  { %v3555_v33 = vmul.f32 0.03125, %v3551_v54 }
0x12c4   :  { %v3557_v55 = vadd.f32 1e-05, %v3555_v33 }
0x12c5   :  { %v3554_v42 = vpop.xlane.xlu0 %3553 }
0x12c6   :  { %4838 = vrsqrt.f32 %v3557_v55  ;;  %v3556_v56 = vmul.f32 0.03125, %v3554_v42 }
0x12c8   :  { %v3558_v44 = vadd.f32 1e-05, %v3556_v56 }
0x12ca   :  { %4840 = vrsqrt.f32 %v3558_v44 }
0x12d0   :  { %v4839_v57 = vpop.eup %4838 }
0x12d1   :  { %v3561_v41 = vmul.f32 %v4839_v57, %v3545_v32 }
0x12d3   :  { %v3569_v46 = vmul.f32 %v4122_v58, %v3561_v41 }
0x12d4   :  { %v4841_v60 = vpop.eup %4840 }
0x12d5   :  { %v3562_v61 = vmul.f32 %v4841_v60, %v3546_v48  ;;  %v5612_v63 = vadd.f32 %v4123_v59, %v3569_v46 }
0x12d7   :  { %v3570_v0 = vmul.f32 %v4122_v58, %v3562_v61  ;;  %4562 = vmatprep.mubr.msk.f32.mxu1 %vm70_vm0, %v5612_v63 }
0x12d9   :  { %v5616_v1 = vadd.f32 %v4123_v59, %v3570_v0 }
0x12db   :  { %4563 = vmatmul.mubr.msk.f32.vlgmr.msra.gmra.mrb[46].mxu1 %vm70_vm0, %v5616_v1 }
0x12dc   :  { %4608 = vmatprep.mubr.msk.f32.mxu1 %vm4881_vm1, %v4880_v36 }
0x13ae   :  { %v4564_v35 = vpop.f32.mrb[46].mxu1 }
0x13af   :  { %v3670_v25 = vadd.f32 %v4564_v35, %v4129_v24  ;;  %v3664_v43 = vpop.f32.mrb[47].mxu1 }
0x13b0   :  { %v3665_v26 = vadd.f32 %v4129_v24, %v3664_v43 }
0x13b1   :  { %v3676_v27 = vmul.f32 0.044715, %v3670_v25  ;;  %v3674_v49 = vmul.f32 0.5, %v3670_v25 }
0x13b2   :  { %v3675_v62 = vmul.f32 0.044715, %v3665_v26  ;;  %v3673_v39 = vmul.f32 0.5, %v3665_v26 }
0x13b3   :  { %v3678_v28 = vmul.f32 %v3676_v27, %v3670_v25  ;;  %v3930_v27 = vld [vmem:[%s5749_s18 + $0x8] sm:$0xff] }
0x13b4   :  { %v3677_v29 = vmul.f32 %v3675_v62, %v3665_v26  ;;  %v3931_v62 = vld [vmem:[%s5749_s18 + $0x10] sm:$0xff] }
0x13b5   :  { %v3680_v30 = vmul.f32 %v3678_v28, %v3670_v25 }
0x13b6   :  { %v3679_v31 = vmul.f32 %v3677_v29, %v3665_v26  ;;  %v3932_v29 = vld [vmem:[%s5749_s18 + $0x18] sm:$0xff] }
0x13b7   :  { %v3682_v48 = vadd.f32 %v3680_v30, %v3670_v25  ;;  %v4744_v30 = vpack.c.bf16 %v3932_v29, %v3931_v62 }
0x13b8   :  { %v3681_v32 = vadd.f32 %v3679_v31, %v3665_v26  ;;  %v3929_v26 = vld [vmem:[%s5749_s18] sm:$0xff] }
0x13b9   :  { %v3684_v45 = vmul.f32 0.7978846, %v3682_v48  ;;  %v4741_v28 = vpack.c.bf16 %v3930_v27, %v3929_v26 }
0x13ba   :  { %v3683_v34 = vmul.f32 0.7978846, %v3681_v32 }
0x13bb   :  { %4842 = vtanh.f32 %v3684_v45 }
0x13bc   :  { %4844 = vtanh.f32 %v3683_v34  ;;  %v4156_v34 = vld [vmem:[%s5750_s19] ss:$0 sm:$0xff] }
0x13c5   :  { %v4843_v21 = vpop.eup %4842 }
0x13c6   :  { %v4845_v38 = vpop.eup %4844  ;;  %v3688_v37 = vadd.f32 1.0, %v4843_v21 }
0x13c7   :  { %v3687_v47 = vadd.f32 1.0, %v4845_v38 }
0x13c8   :  { %v3690_v52 = vmul.f32 %v3688_v37, %v3674_v49 }
0x13c9   :  { %v3689_v50 = vmul.f32 %v3687_v47, %v3673_v39 }
0x13cb   :  { %4597 = vmatprep.mubr.f32.mxu0 %v3689_v50 }
0x13cc   :  { %4598 = vmatmul.mubr.f32.vlgmr.msra.gmra.mrb[30].mxu0 %v3690_v52 }
0x149f   :  { %v4599_v51 = vpop.f32.mrb[30].mxu0 }
0x14a0   :  { %v3788_v40 = vadd.f32 %v4599_v51, %v4149_v53  ;;  %v3782_v54 = vpop.f32.mrb[31].mxu0 }
0x14a1   :  { %v3783_v33 = vadd.f32 %v4149_v53, %v3782_v54 }
0x14a2   :  { %v3792_v55 = vadd.f32 %v3788_v40, %v5616_v1 }
0x14a3   :  { %v3791_v42 = vadd.f32 %v3783_v33, %v5612_v63  ;;  %v3844_v63 = vld [vmem:[%s5747_s16] sm:$0xff] }
0x14a4   :  { %v3800_v56 = vsel %vm70_vm0, %v3792_v55, 0.0  ;;  %v4735_v4 = vpack.c.bf16 %v3845_v3, %v3844_v63 }
0x14a5   :  { %3801 = vadd.xlane.f32.xlu0 %v3800_v56  ;;  %v3797_v44 = vsel %vm70_vm0, %v3791_v42, 0.0 }
0x14a6   :  { %3798 = vadd.xlane.f32.xlu1 %v3797_v44  ;;  %4736 = vmatpush3.bf16.msra.mxu1 %v4735_v4 }
0x14a7   :  { %4737 = vmatprep.subr.bf16.mxu1 %v4890_v7 }
0x14aa   :  { %4739 = vmatpush3.bf16.msra.mxu1 %v4738_v8 }
0x14ab   :  { %4740 = vmatprep.subr.bf16.mxu1 %v4890_v7 }
0x1532   :  { %v3802_v57 = vpop.xlane.xlu0 %3801 }
0x1533   :  { %v3804_v58 = vmul.f32 0.03125, %v3802_v57  ;;  %v3799_v41 = vpop.xlane.xlu1 %3798 }
0x1534   :  { %v3803_v59 = vmul.f32 0.03125, %v3799_v41 }
0x1535   :  { %v3806_v46 = vsub.f32 %v3792_v55, %v3804_v58 }
0x1536   :  { %v3805_v60 = vsub.f32 %v3791_v42, %v3803_v59 }
0x1537   :  { %v3808_v61 = vmul.f32 %v3806_v46, %v3806_v46 }
0x1538   :  { %v3807_v0 = vmul.f32 %v3805_v60, %v3805_v60 }
0x1539   :  { %v3812_v2 = vsel %vm70_vm0, %v3808_v61, 0.0 }
0x153a   :  { %3813 = vadd.xlane.f32.xlu0 %v3812_v2  ;;  %v3809_v1 = vsel %vm70_vm0, %v3807_v0, 0.0 }
0x153b   :  { %3810 = vadd.xlane.f32.xlu1 %v3809_v1 }
0x15c7   :  { %v3814_v9 = vpop.xlane.xlu0 %3813 }
0x15c8   :  { %v3816_v11 = vmul.f32 0.03125, %v3814_v9  ;;  %v3811_v13 = vpop.xlane.xlu1 %3810 }
0x15c9   :  { %v3815_v14 = vmul.f32 0.03125, %v3811_v13 }
0x15ca   :  { %v3818_v15 = vadd.f32 1e-05, %v3816_v11 }
0x15cb   :  { %v3817_v12 = vadd.f32 1e-05, %v3815_v14 }
0x15cc   :  { %4846 = vrsqrt.f32 %v3818_v15 }
0x15cd   :  { %4848 = vrsqrt.f32 %v3817_v12 }
0x15d6   :  { %v4847_v10 = vpop.eup %4846 }
0x15d7   :  { %v4849_v17 = vpop.eup %4848  ;;  %v3822_v18 = vmul.f32 %v4847_v10, %v3806_v46 }
0x15d8   :  { %v3821_v19 = vmul.f32 %v4849_v17, %v3805_v60 }
0x15d9   :  { %v3830_v22 = vmul.f32 %v4152_v16, %v3822_v18 }
0x15da   :  { %v3829_v23 = vmul.f32 %v4152_v16, %v3821_v19 }
0x15db   :  { %v3838_v24 = vadd.f32 %v4153_v20, %v3830_v22 }
0x15dc   :  { %v3837_v35 = vadd.f32 %v4153_v20, %v3829_v23 }
0x15dd   :  { %v3840_v25 = vrot.slane %v3838_v24, 7 }
0x15df   :  { %v3843_v43 = vsel %vm3842_vm5, %v3837_v35, %v3840_v25 }
0x15e0   :  { %4609 = vmatmul.mubr.msk.f32.vlgmr.msra.gmra.mrb[48].mxu1 %vm70_vm0, %v3843_v43 }
0x15e1   :  { %4619 = vmatprep.mubr.msk.f32.mxu1 %vm4881_vm1, %v4880_v36  ;;  %4742 = vmatpush3.bf16.msra.mxu1 %v4741_v28  ;;  %v4154_v36 = vld [vmem:[%s5748_s17] ss:$0 sm:$0xff]  ;;  %s4891_s17 = smov [#allocation2]  }
0x15e2   :  { %4743 = vmatprep.subr.bf16.mxu1 %v4890_v7  ;;  %s4032_s18 = sshll.u32 %s4891_s17, 4  ;;  %s4033_s18 = int_to_ptr.vmem [resolvable:$true] %s4032_s18 }
0x15e3   :  { %s4856_s19 = scalar_lea.vmem %s4033_s18, 32  ;;  %p4861_p1 = scmp.lt.s32.totalorder %s4033_s18, %s4033_s18 }
0x15e4   :  { %p4857_p0 = scmp.ne.s32.totalorder %s4033_s18, %s4856_s19  ;;  %p4862_p2 = scmp.lt.s32.totalorder %s4856_s19, %s4856_s19 }
0x15e5   :  { %4745 = vmatpush3.bf16.msra.mxu1 %v4744_v30 }
0x15e6   :  { %p4863_p3 = por %p4862_p2, %p4861_p1 }
0x15e8   :  { %p4864_p4 = pnand %p4863_p3, %p4857_p0 }
0x16b3   :  { %v3924_v31 = vpop.f32.mrb[48].mxu1 }
0x16b4   :  { %v3925_v48 = vadd.f32 %v4154_v36, %v3924_v31  ;;  %v4610_v32 = vpop.f32.mrb[49].mxu1 }
0x16b6   :  { %4850 = vtanh.f32 %v3925_v48 }
0x16c0   :  { %v4851_v45 = vpop.eup %4850 }
0x16c1   :  { %4620 = vmatmul.mubr.msk.f32.vlgmr.msra.gmra.mrb[50].mxu1 %vm70_vm0, %v4851_v45 }
0x1794   :  { %v4009_v21 = vpop.f32.mrb[50].mxu1 }
0x1795   :  { %v4010_v38 = vadd.f32 %v4156_v34, %v4009_v21  ;;  %v4621_v37 = vpop.f32.mrb[51].mxu1 }
0x1797   :  { %v4014_v39 = vsel %vm4013_vm6, %v4010_v38, -inf }
0x1798   :  { %4015 = vmax.xlane.f32.xlu0 %v4014_v39 }
0x1825   :  { %v4016_v47 = vpop.xlane.xlu0 %4015 }
0x1826   :  { %v4017_v49 = vsub.f32 %v4010_v38, %v4016_v47 }
0x1828   :  { %v4018_v50 = vmul.f32 1.442695, %v4017_v49 }
0x182a   :  { %4852 = vpow2.f32 %v4018_v50 }
0x1834   :  { %v4853_v52 = vpop.eup %4852 }
0x1835   :  { %v4020_v53 = vsel %vm4013_vm6, %v4853_v52, 0.0 }
0x1836   :  { %4021 = vadd.xlane.f32.xlu1 %v4020_v53 }
0x18c3   :  { %v4022_v51 = vpop.xlane.xlu1 %4021 }
0x18c4   :  { %4854 = vrcp.f32 %v4022_v51 }
0x18ce   :  { %v4855_v40 = vpop.eup %4854 }
0x18cf   :  { %v4024_v54 = vmul.f32 %v4855_v40, %v4853_v52 }
0x18d1   :  { %4025 = vst.msk [vmem:[#allocation2] sm:$0x3] %vm4013_vm6, %v4024_v54 }
0x18d2   :  { %4867 = shalt.err (!%p4864_p4)
}
0x18d3   :  { %s4868_s12 = scalar_lea.hbm %s5751_s20, 32 }
0x18d4   :  { %p4869_p5 = scmp.ne.s32.totalorder %s5751_s20, %s4868_s12  ;;  %p4872_p6 = scmp.lt.u32.totalorder %s4868_s12, %s5751_s20 }
0x18d6   :  { %p4874_p7 = pnand %p4872_p6, %p4869_p5 }
0x18d8   :  { %4877 = shalt.err (!%p4874_p7)
}
0x18d9   :  { %4035 = dma.vmem_to_hbm [thread:$0]  %s4033_s18, 32, %s5751_s20, [#allocation3]  }
0x18da   :  { %4878 = dma.done.wait [#allocation3], 32  }
0x18db   :  { %4879 = vsyncadd [#allocation3], 4294967264 }
0x18dc   :  { %4039 = vsyncpa [#allocation3], 1 }

</bundles_post_ra>
